<compile_context>
chip_gen: v7x
topology: tpu7x:2x2x1
jax: 0.10.0
libtpu: 0.0.40
codegen_flags: <defaults>
</compile_context>

<pallas_src>
import math
import numpy as np
import jax
import jax.numpy as jnp
from jax.experimental import pallas as pl
from jax.experimental.pallas import tpu as pltpu

# ---------------- config (small, consistent with the module) ----------------
VOCAB_SIZE = 10
OBS_DIM = 3
ACT_DIM = 2
TRANSITION_DIM = OBS_DIM + ACT_DIM + 2            # obs + act + reward + value = 7
BLOCK_SIZE_ORIG = 14
BLOCK_SIZE = BLOCK_SIZE_ORIG + OBS_DIM            # ConditionalGPT: block_size += observation_dim
N_EMBD = 32
N_HEAD = 4
N_LAYER = 2
STOP_TOKEN = VOCAB_SIZE * TRANSITION_DIM
LN_EPS = 1e-5
V1 = VOCAB_SIZE + 1


# ----------------------------- Pallas kernel ---------------------------------
def _layernorm(h, w, b):
    mu = jnp.mean(h, axis=-1, keepdims=True)
    var = jnp.mean((h - mu) ** 2, axis=-1, keepdims=True)
    return (h - mu) * jax.lax.rsqrt(var + LN_EPS) * w + b


def fused_gpt_kernel(x_ref, maskb_ref, sel_ref,
                     ln1w_ref, ln1b_ref, wqkv_ref, bqkv_ref, wp_ref, bp_ref,
                     ln2w_ref, ln2b_ref, w1_ref, b1_ref, w2_ref, b2_ref,
                     lnfw_ref, lnfb_ref, headw_ref,
                     out_ref):
    """Full forward for one batch element (grid over batch):
       N_LAYER pre-LN transformer blocks -> ln_f -> EinLinear head."""
    x = x_ref[0]                                    # [T, C]  (T = obs_dim + t)
    T, C = x.shape
    hd = C // N_HEAD
    scale = 1.0 / math.sqrt(hd)
    mb = maskb_ref[...]                             # [T, T] additive bias (0 / -1e30)

    for l in range(N_LAYER):                        # static unroll over layers
        # --- attention ---
        h = _layernorm(x, ln1w_ref[l], ln1b_ref[l])
        qkv = jnp.dot(h, wqkv_ref[l], preferred_element_type=jnp.float32) + bqkv_ref[l]
        q = qkv[:, 0 * C:1 * C] * scale             # fold 1/sqrt(hd) once into q
        k = qkv[:, 1 * C:2 * C]
        v = qkv[:, 2 * C:3 * C]

        heads = []
        for hh in range(N_HEAD):                    # static unroll over heads
            lo, hi = hh * hd, (hh + 1) * hd
            s = jnp.dot(q[:, lo:hi], k[:, lo:hi].T,
                        preferred_element_type=jnp.float32) + mb
            # NOTE: -1e30 (not -inf); a fully-masked row would give uniform attention
            # instead of NaN, but such rows are unreachable with this mask.
            s = s - jnp.max(s, axis=-1, keepdims=True)
            p = jnp.exp(s)
            p = p * pl.reciprocal(jnp.sum(p, axis=-1, keepdims=True), approx=False)
            heads.append(jnp.dot(p, v[:, lo:hi], preferred_element_type=jnp.float32))

        y = jnp.concatenate(heads, axis=-1)         # [T, C]
        y = jnp.dot(y, wp_ref[l], preferred_element_type=jnp.float32) + bp_ref[l]
        x = x + y

        # --- MLP ---
        h2 = _layernorm(x, ln2w_ref[l], ln2b_ref[l])
        m = jnp.dot(h2, w1_ref[l], preferred_element_type=jnp.float32) + b1_ref[l]
        m = 0.5 * m * (1.0 + jax.lax.erf(m * (1.0 / math.sqrt(2.0))))   # exact GELU
        x = x + jnp.dot(m, w2_ref[l], preferred_element_type=jnp.float32) + b2_ref[l]

    # --- ln_f + EinLinear head (goal prefix dropped; padded rows never computed) ---
    t_len = T - OBS_DIM
    hf = _layernorm(x[OBS_DIM:, :], lnfw_ref[...], lnfb_ref[...])       # [t, C]
    acc = jnp.zeros((t_len, V1), jnp.float32)
    for e in range(TRANSITION_DIM):                 # row r uses weight W[r % 7]
        acc = acc + sel_ref[e] * jnp.dot(hf, headw_ref[e],
                                         preferred_element_type=jnp.float32)
    out_ref[0] = acc


# ------------------------------ pallas wrapper --------------------------------
def offset_tokens(tok):
    t = tok.shape[1]
    n_states = int(math.ceil(t / TRANSITION_DIM))
    offsets = jnp.tile(jnp.arange(TRANSITION_DIM, dtype=jnp.int32) * VOCAB_SIZE,
                       n_states)[:t]
    off = tok + offsets[None, :]
    return jnp.where(tok == VOCAB_SIZE, STOP_TOKEN, off)


def conditional_gpt_forward(params, idx, goal):
    b, t = idx.shape
    assert t <= BLOCK_SIZE, "Cannot forward, model block size is exhausted."

    # embeddings (gathers stay in JAX glue)
    goal_emb = jnp.take(params["goal_emb"], offset_tokens(goal), axis=0)   # [b, obs, C]
    tok_emb = jnp.take(params["tok_emb"], offset_tokens(idx), axis=0)      # [b, t, C]
    x = tok_emb + params["pos_emb"][:, :t, :]        # drop(.) is identity in eval mode
    gx = jnp.concatenate([goal_emb, x], axis=1).astype(jnp.float32)        # [b, obs+t, C]
    T = gx.shape[1]

    # additive attention mask bias (precomputed once; kernel just adds it)
    mask_bias = jnp.where(params["mask"][:T, :T] == 0.0,
                          jnp.float32(-1e30), jnp.float32(0.0))

    # EinLinear row -> transition-slot selection mask  [E, t, V1]
    rows = np.arange(t)
    sel_np = np.zeros((TRANSITION_DIM, t, V1), np.float32)
    sel_np[rows % TRANSITION_DIM, rows, :] = 1.0
    sel = jnp.asarray(sel_np)

    # stack per-layer weights along a leading layer axis; fuse q/k/v
    L = params["layers"]
    stk = lambda key: jnp.stack([lp[key] for lp in L])
    wqkv = jnp.stack([jnp.concatenate([lp["wq"], lp["wk"], lp["wv"]], axis=-1) for lp in L])
    bqkv = jnp.stack([jnp.concatenate([lp["bq"], lp["bk"], lp["bv"]], axis=-1) for lp in L])
    weight_args = (stk("ln1_w"), stk("ln1_b"), wqkv, bqkv, stk("wp"), stk("bp"),
                   stk("ln2_w"), stk("ln2_b"), stk("w1"), stk("b1"),
                   stk("w2"), stk("b2"),
                   params["lnf_w"], params["lnf_b"], params["head_w"])

    def full_spec(a):
        return pl.BlockSpec(a.shape, lambda b_, _nd=a.ndim: (0,) * _nd)

    in_specs = ([pl.BlockSpec((1, T, N_EMBD), lambda b_: (b_, 0, 0)),
                 full_spec(mask_bias),
                 full_spec(sel)]
                + [full_spec(a) for a in weight_args])

    logits = pl.pallas_call(
        fused_gpt_kernel,
        out_shape=jax.ShapeDtypeStruct((b, t, V1), jnp.float32),
        grid=(b,),
        in_specs=in_specs,
        out_specs=pl.BlockSpec((1, t, V1), lambda b_: (b_, 0, 0)),
        compiler_params=pltpu.CompilerParams(dimension_semantics=("parallel",)),
    )(gx, mask_bias, sel, *weight_args)
    return logits


# ------------------------------ reference (jnp) -------------------------------
def _ln_ref(h, w, b):
    mu = jnp.mean(h, axis=-1, keepdims=True)
    var = jnp.mean((h - mu) ** 2, axis=-1, keepdims=True)
    return (h - mu) / jnp.sqrt(var + LN_EPS) * w + b


def _ref_block(x, mask, lp):
    B, T, C = x.shape
    hd = C // N_HEAD
    h = _ln_ref(x, lp["ln1_w"], lp["ln1_b"])
    q = (h @ lp["wq"] + lp["bq"]).reshape(B, T, N_HEAD, hd).transpose(0, 2, 1, 3)
    k = (h @ lp["wk"] + lp["bk"]).reshape(B, T, N_HEAD, hd).transpose(0, 2, 1, 3)
    v = (h @ lp["wv"] + lp["bv"]).reshape(B, T, N_HEAD, hd).transpose(0, 2, 1, 3)
    att = (q @ k.transpose(0, 1, 3, 2)) * (1.0 / math.sqrt(hd))
    att = jnp.where(mask[None, None] == 0.0, -jnp.inf, att)
    att = jax.nn.softmax(att, axis=-1)
    y = (att @ v).transpose(0, 2, 1, 3).reshape(B, T, C)
    y = y @ lp["wp"] + lp["bp"]
    x = x + y
    h2 = _ln_ref(x, lp["ln2_w"], lp["ln2_b"])
    m = jax.nn.gelu(h2 @ lp["w1"] + lp["b1"], approximate=False)
    m = m @ lp["w2"] + lp["b2"]
    return x + m


def reference_forward(params, idx, goal):
    b, t = idx.shape
    ge = params["goal_emb"][offset_tokens(goal)]
    te = params["tok_emb"][offset_tokens(idx)]
    x = te + params["pos_emb"][:, :t, :]
    gx = jnp.concatenate([ge, x], axis=1)
    T = gx.shape[1]
    mask = params["mask"][:T, :T]
    for lp in params["layers"]:
        gx = _ref_block(gx, mask, lp)
    x = _ln_ref(gx[:, OBS_DIM:], params["lnf_w"], params["lnf_b"])
    n_pad = (TRANSITION_DIM - t % TRANSITION_DIM) % TRANSITION_DIM
    x_pad = jnp.concatenate([x, jnp.zeros((b, n_pad, N_EMBD), x.dtype)], axis=1)
    x_pad = x_pad.reshape(-1, TRANSITION_DIM, N_EMBD)
    logits = jnp.einsum("nec,ecv->nev", x_pad, params["head_w"])
    return logits.reshape(b, t + n_pad, V1)[:, :t]


# ------------------------------ parameter init --------------------------------
def init_params(key):
    keys = jax.random.split(key, 4 + N_LAYER)

    def normal(k, shape):
        return (0.02 * jax.random.normal(k, shape)).astype(jnp.float32)

    C, H = N_EMBD, 4 * N_EMBD
    params = {
        "tok_emb": normal(keys[0], (VOCAB_SIZE * TRANSITION_DIM + 1, C)),
        "goal_emb": normal(keys[1], (VOCAB_SIZE * OBS_DIM, C)),
        "pos_emb": normal(keys[2], (1, BLOCK_SIZE, C)),
        "lnf_w": jnp.ones((1, C), jnp.float32),
        "lnf_b": jnp.zeros((1, C), jnp.float32),
        "head_w": normal(keys[3], (TRANSITION_DIM, C, V1)),
    }
    # causal mask with "value" columns zeroed (mask.squeeze()[:, joined_dim-1::joined_dim] = 0)
    mask = np.tril(np.ones((BLOCK_SIZE, BLOCK_SIZE), np.float32))
    joined = OBS_DIM + ACT_DIM + 2
    mask[:, joined - 1::joined] = 0.0
    params["mask"] = jnp.asarray(mask)

    layers = []
    for l in range(N_LAYER):
        lk = jax.random.split(keys[4 + l], 6)
        layers.append(dict(
            ln1_w=jnp.ones((1, C), jnp.float32), ln1_b=jnp.zeros((1, C), jnp.float32),
            wq=normal(lk[0], (C, C)), bq=jnp.zeros((1, C), jnp.float32),
            wk=normal(lk[1], (C, C)), bk=jnp.zeros((1, C), jnp.float32),
            wv=normal(lk[2], (C, C)), bv=jnp.zeros((1, C), jnp.float32),
            wp=normal(lk[3], (C, C)), bp=jnp.zeros((1, C), jnp.float32),
            ln2_w=jnp.ones((1, C), jnp.float32), ln2_b=jnp.zeros((1, C), jnp.float32),
            w1=normal(lk[4], (C, H)), b1=jnp.zeros((1, H), jnp.float32),
            w2=normal(lk[5], (H, C)), b2=jnp.zeros((1, C), jnp.float32),
        ))
    params["layers"] = layers
    return params


# ----------------------------------- main -------------------------------------
if __name__ == "__main__":
    key = jax.random.PRNGKey(0)
    pkey, ikey, gkey = jax.random.split(key, 3)
    params = init_params(pkey)

    B, t = 2, 12                       # t not a multiple of transition_dim -> exercises slot mapping
    idx = jax.random.randint(ikey, (B, t), 0, VOCAB_SIZE, dtype=jnp.int32)
    goal = jax.random.randint(gkey, (B, OBS_DIM), 0, VOCAB_SIZE, dtype=jnp.int32)

    logits = conditional_gpt_forward(params, idx, goal)
    logits = jax.block_until_ready(logits)
    assert logits.shape == (B, t, V1)

    ref = reference_forward(params, idx, goal)
    np.testing.assert_allclose(np.asarray(logits), np.asarray(ref), rtol=1e-4, atol=1e-4)

    print("KERNEL_OK")
</pallas_src>

<mosaic_0001>
module attributes {stable_mosaic.version = 11 : i64} {
  func.func @fused_gpt_kernel(%arg0: i32, %arg1: memref<1x15x32xf32, #tpu.memory_space<vmem>>, %arg2: memref<15x15xf32, #tpu.memory_space<vmem>>, %arg3: memref<7x12x11xf32, #tpu.memory_space<vmem>>, %arg4: memref<2x1x32xf32, #tpu.memory_space<vmem>>, %arg5: memref<2x1x32xf32, #tpu.memory_space<vmem>>, %arg6: memref<2x32x96xf32, #tpu.memory_space<vmem>>, %arg7: memref<2x1x96xf32, #tpu.memory_space<vmem>>, %arg8: memref<2x32x32xf32, #tpu.memory_space<vmem>>, %arg9: memref<2x1x32xf32, #tpu.memory_space<vmem>>, %arg10: memref<2x1x32xf32, #tpu.memory_space<vmem>>, %arg11: memref<2x1x32xf32, #tpu.memory_space<vmem>>, %arg12: memref<2x32x128xf32, #tpu.memory_space<vmem>>, %arg13: memref<2x1x128xf32, #tpu.memory_space<vmem>>, %arg14: memref<2x128x32xf32, #tpu.memory_space<vmem>>, %arg15: memref<2x1x32xf32, #tpu.memory_space<vmem>>, %arg16: memref<1x32xf32, #tpu.memory_space<vmem>>, %arg17: memref<1x32xf32, #tpu.memory_space<vmem>>, %arg18: memref<7x32x11xf32, #tpu.memory_space<vmem>>, %arg19: memref<1x12x11xf32, #tpu.memory_space<vmem>>) attributes {dimension_semantics = [#tpu.dimension_semantics<parallel>], iteration_bounds = array<i64: 2>, scalar_prefetch = 0 : i64, scratch_operands = 0 : i64, tpu.core_type = #tpu.core_type<tc>, window_params = [{transform_indices = @transform_0, window_bounds = array<i64: 1, 15, 32>}, {pipeline_mode = #tpu.pipeline_mode<synchronous>, transform_indices = @transform_1, window_bounds = array<i64: 15, 15>}, {pipeline_mode = #tpu.pipeline_mode<synchronous>, transform_indices = @transform_2, window_bounds = array<i64: 7, 12, 11>}, {pipeline_mode = #tpu.pipeline_mode<synchronous>, transform_indices = @transform_3, window_bounds = array<i64: 2, 1, 32>}, {pipeline_mode = #tpu.pipeline_mode<synchronous>, transform_indices = @transform_4, window_bounds = array<i64: 2, 1, 32>}, {pipeline_mode = #tpu.pipeline_mode<synchronous>, transform_indices = @transform_5, window_bounds = array<i64: 2, 32, 96>}, {pipeline_mode = #tpu.pipeline_mode<synchronous>, transform_indices = @transform_6, window_bounds = array<i64: 2, 1, 96>}, {pipeline_mode = #tpu.pipeline_mode<synchronous>, transform_indices = @transform_7, window_bounds = array<i64: 2, 32, 32>}, {pipeline_mode = #tpu.pipeline_mode<synchronous>, transform_indices = @transform_8, window_bounds = array<i64: 2, 1, 32>}, {pipeline_mode = #tpu.pipeline_mode<synchronous>, transform_indices = @transform_9, window_bounds = array<i64: 2, 1, 32>}, {pipeline_mode = #tpu.pipeline_mode<synchronous>, transform_indices = @transform_10, window_bounds = array<i64: 2, 1, 32>}, {pipeline_mode = #tpu.pipeline_mode<synchronous>, transform_indices = @transform_11, window_bounds = array<i64: 2, 32, 128>}, {pipeline_mode = #tpu.pipeline_mode<synchronous>, transform_indices = @transform_12, window_bounds = array<i64: 2, 1, 128>}, {pipeline_mode = #tpu.pipeline_mode<synchronous>, transform_indices = @transform_13, window_bounds = array<i64: 2, 128, 32>}, {pipeline_mode = #tpu.pipeline_mode<synchronous>, transform_indices = @transform_14, window_bounds = array<i64: 2, 1, 32>}, {pipeline_mode = #tpu.pipeline_mode<synchronous>, transform_indices = @transform_15, window_bounds = array<i64: 1, 32>}, {pipeline_mode = #tpu.pipeline_mode<synchronous>, transform_indices = @transform_16, window_bounds = array<i64: 1, 32>}, {pipeline_mode = #tpu.pipeline_mode<synchronous>, transform_indices = @transform_17, window_bounds = array<i64: 7, 32, 11>}, {transform_indices = @transform_18, window_bounds = array<i64: 1, 12, 11>}]} {
    %c0 = arith.constant 0 : index
    %c0_0 = arith.constant 0 : index
    %c0_1 = arith.constant 0 : index
    %0 = vector.load %arg1[%c0, %c0_0, %c0_1] : memref<1x15x32xf32, #tpu.memory_space<vmem>>, vector<1x15x32xf32>
    %1 = vector.shape_cast %0 : vector<1x15x32xf32> to vector<15x32xf32>
    %c0_2 = arith.constant 0 : index
    %c0_3 = arith.constant 0 : index
    %2 = vector.load %arg2[%c0_2, %c0_3] : memref<15x15xf32, #tpu.memory_space<vmem>>, vector<15x15xf32>
    %c0_4 = arith.constant 0 : index
    %c0_5 = arith.constant 0 : index
    %c0_6 = arith.constant 0 : index
    %3 = vector.load %arg4[%c0_4, %c0_5, %c0_6] : memref<2x1x32xf32, #tpu.memory_space<vmem>>, vector<1x1x32xf32>
    %4 = vector.shape_cast %3 : vector<1x1x32xf32> to vector<1x32xf32>
    %c0_7 = arith.constant 0 : index
    %c0_8 = arith.constant 0 : index
    %c0_9 = arith.constant 0 : index
    %5 = vector.load %arg5[%c0_7, %c0_8, %c0_9] : memref<2x1x32xf32, #tpu.memory_space<vmem>>, vector<1x1x32xf32>
    %6 = vector.shape_cast %5 : vector<1x1x32xf32> to vector<1x32xf32>
    %cst = arith.constant dense<0.000000e+00> : vector<15xf32>
    %7 = vector.multi_reduction <add>, %1, %cst [1] : vector<15x32xf32> to vector<15xf32>
    %8 = vector.shape_cast %7 : vector<15xf32> to vector<15x1xf32>
    %cst_10 = arith.constant 3.200000e+01 : f32
    %9 = vector.broadcast %cst_10 : f32 to vector<15x1xf32>
    %10 = arith.divf %8, %9 : vector<15x1xf32>
    %11 = vector.broadcast %10 : vector<15x1xf32> to vector<15x32xf32>
    %12 = arith.subf %1, %11 : vector<15x32xf32>
    %13 = arith.mulf %12, %12 : vector<15x32xf32>
    %cst_11 = arith.constant dense<0.000000e+00> : vector<15xf32>
    %14 = vector.multi_reduction <add>, %13, %cst_11 [1] : vector<15x32xf32> to vector<15xf32>
    %15 = vector.shape_cast %14 : vector<15xf32> to vector<15x1xf32>
    %cst_12 = arith.constant 3.200000e+01 : f32
    %16 = vector.broadcast %cst_12 : f32 to vector<15x1xf32>
    %17 = arith.divf %15, %16 : vector<15x1xf32>
    %18 = vector.broadcast %10 : vector<15x1xf32> to vector<15x32xf32>
    %19 = arith.subf %1, %18 : vector<15x32xf32>
    %cst_13 = arith.constant 9.99999974E-6 : f32
    %20 = vector.broadcast %cst_13 : f32 to vector<15x1xf32>
    %21 = arith.addf %17, %20 : vector<15x1xf32>
    %22 = math.rsqrt %21 : vector<15x1xf32>
    %23 = vector.broadcast %22 : vector<15x1xf32> to vector<15x32xf32>
    %24 = arith.mulf %19, %23 : vector<15x32xf32>
    %25 = vector.broadcast %4 : vector<1x32xf32> to vector<15x32xf32>
    %26 = arith.mulf %24, %25 : vector<15x32xf32>
    %27 = vector.broadcast %6 : vector<1x32xf32> to vector<15x32xf32>
    %28 = arith.addf %26, %27 : vector<15x32xf32>
    %c0_14 = arith.constant 0 : index
    %c0_15 = arith.constant 0 : index
    %c0_16 = arith.constant 0 : index
    %29 = vector.load %arg6[%c0_14, %c0_15, %c0_16] : memref<2x32x96xf32, #tpu.memory_space<vmem>>, vector<1x32x96xf32>
    %30 = vector.shape_cast %29 : vector<1x32x96xf32> to vector<32x96xf32>
    %cst_17 = arith.constant dense<0.000000e+00> : vector<15x96xf32>
    %31 = tpu.matmul %28, %30, %cst_17 {dimension_numbers = #tpu.dot_dimension_numbers<[1], [0], [0], [1], [0, 0, 1, 1], [], []>} : vector<15x32xf32>, vector<32x96xf32>, vector<15x96xf32> -> vector<15x96xf32>
    %c0_18 = arith.constant 0 : index
    %c0_19 = arith.constant 0 : index
    %c0_20 = arith.constant 0 : index
    %32 = vector.load %arg7[%c0_18, %c0_19, %c0_20] : memref<2x1x96xf32, #tpu.memory_space<vmem>>, vector<1x1x96xf32>
    %33 = vector.shape_cast %32 : vector<1x1x96xf32> to vector<1x96xf32>
    %34 = vector.broadcast %33 : vector<1x96xf32> to vector<15x96xf32>
    %35 = arith.addf %31, %34 : vector<15x96xf32>
    %36 = vector.extract_strided_slice %35 {offsets = [0, 0], sizes = [15, 32], strides = [1, 1]} : vector<15x96xf32> to vector<15x32xf32>
    %cst_21 = arith.constant 0.353553385 : f32
    %37 = vector.broadcast %cst_21 : f32 to vector<15x32xf32>
    %38 = arith.mulf %36, %37 : vector<15x32xf32>
    %39 = vector.extract_strided_slice %35 {offsets = [0, 32], sizes = [15, 32], strides = [1, 1]} : vector<15x96xf32> to vector<15x32xf32>
    %40 = vector.extract_strided_slice %35 {offsets = [0, 64], sizes = [15, 32], strides = [1, 1]} : vector<15x96xf32> to vector<15x32xf32>
    %41 = vector.extract_strided_slice %38 {offsets = [0, 0], sizes = [15, 8], strides = [1, 1]} : vector<15x32xf32> to vector<15x8xf32>
    %42 = vector.extract_strided_slice %39 {offsets = [0, 0], sizes = [15, 8], strides = [1, 1]} : vector<15x32xf32> to vector<15x8xf32>
    %43 = tpu.transpose %42, [1, 0] : vector<15x8xf32> -> vector<8x15xf32>
    %cst_22 = arith.constant dense<0.000000e+00> : vector<15x15xf32>
    %44 = tpu.matmul %41, %43, %cst_22 {dimension_numbers = #tpu.dot_dimension_numbers<[1], [0], [0], [1], [0, 0, 1, 1], [], []>} : vector<15x8xf32>, vector<8x15xf32>, vector<15x15xf32> -> vector<15x15xf32>
    %45 = arith.addf %44, %2 : vector<15x15xf32>
    %cst_23 = arith.constant dense<0xFF800000> : vector<15xf32>
    %46 = vector.multi_reduction <maximumf>, %45, %cst_23 [1] : vector<15x15xf32> to vector<15xf32>
    %47 = vector.shape_cast %46 : vector<15xf32> to vector<15x1xf32>
    %48 = vector.broadcast %47 : vector<15x1xf32> to vector<15x15xf32>
    %49 = arith.subf %45, %48 : vector<15x15xf32>
    %50 = math.exp %49 : vector<15x15xf32>
    %cst_24 = arith.constant dense<0.000000e+00> : vector<15xf32>
    %51 = vector.multi_reduction <add>, %50, %cst_24 [1] : vector<15x15xf32> to vector<15xf32>
    %52 = vector.shape_cast %51 : vector<15xf32> to vector<15x1xf32>
    %53 = tpu.reciprocal %52 : vector<15x1xf32> -> vector<15x1xf32>
    %54 = vector.broadcast %53 : vector<15x1xf32> to vector<15x15xf32>
    %55 = arith.mulf %50, %54 : vector<15x15xf32>
    %56 = vector.extract_strided_slice %40 {offsets = [0, 0], sizes = [15, 8], strides = [1, 1]} : vector<15x32xf32> to vector<15x8xf32>
    %cst_25 = arith.constant dense<0.000000e+00> : vector<15x8xf32>
    %57 = tpu.matmul %55, %56, %cst_25 {dimension_numbers = #tpu.dot_dimension_numbers<[1], [0], [0], [1], [0, 0, 1, 1], [], []>} : vector<15x15xf32>, vector<15x8xf32>, vector<15x8xf32> -> vector<15x8xf32>
    %58 = vector.extract_strided_slice %38 {offsets = [0, 8], sizes = [15, 8], strides = [1, 1]} : vector<15x32xf32> to vector<15x8xf32>
    %59 = vector.extract_strided_slice %39 {offsets = [0, 8], sizes = [15, 8], strides = [1, 1]} : vector<15x32xf32> to vector<15x8xf32>
    %60 = tpu.transpose %59, [1, 0] : vector<15x8xf32> -> vector<8x15xf32>
    %cst_26 = arith.constant dense<0.000000e+00> : vector<15x15xf32>
    %61 = tpu.matmul %58, %60, %cst_26 {dimension_numbers = #tpu.dot_dimension_numbers<[1], [0], [0], [1], [0, 0, 1, 1], [], []>} : vector<15x8xf32>, vector<8x15xf32>, vector<15x15xf32> -> vector<15x15xf32>
    %62 = arith.addf %61, %2 : vector<15x15xf32>
    %cst_27 = arith.constant dense<0xFF800000> : vector<15xf32>
    %63 = vector.multi_reduction <maximumf>, %62, %cst_27 [1] : vector<15x15xf32> to vector<15xf32>
    %64 = vector.shape_cast %63 : vector<15xf32> to vector<15x1xf32>
    %65 = vector.broadcast %64 : vector<15x1xf32> to vector<15x15xf32>
    %66 = arith.subf %62, %65 : vector<15x15xf32>
    %67 = math.exp %66 : vector<15x15xf32>
    %cst_28 = arith.constant dense<0.000000e+00> : vector<15xf32>
    %68 = vector.multi_reduction <add>, %67, %cst_28 [1] : vector<15x15xf32> to vector<15xf32>
    %69 = vector.shape_cast %68 : vector<15xf32> to vector<15x1xf32>
    %70 = tpu.reciprocal %69 : vector<15x1xf32> -> vector<15x1xf32>
    %71 = vector.broadcast %70 : vector<15x1xf32> to vector<15x15xf32>
    %72 = arith.mulf %67, %71 : vector<15x15xf32>
    %73 = vector.extract_strided_slice %40 {offsets = [0, 8], sizes = [15, 8], strides = [1, 1]} : vector<15x32xf32> to vector<15x8xf32>
    %cst_29 = arith.constant dense<0.000000e+00> : vector<15x8xf32>
    %74 = tpu.matmul %72, %73, %cst_29 {dimension_numbers = #tpu.dot_dimension_numbers<[1], [0], [0], [1], [0, 0, 1, 1], [], []>} : vector<15x15xf32>, vector<15x8xf32>, vector<15x8xf32> -> vector<15x8xf32>
    %75 = vector.extract_strided_slice %38 {offsets = [0, 16], sizes = [15, 8], strides = [1, 1]} : vector<15x32xf32> to vector<15x8xf32>
    %76 = vector.extract_strided_slice %39 {offsets = [0, 16], sizes = [15, 8], strides = [1, 1]} : vector<15x32xf32> to vector<15x8xf32>
    %77 = tpu.transpose %76, [1, 0] : vector<15x8xf32> -> vector<8x15xf32>
    %cst_30 = arith.constant dense<0.000000e+00> : vector<15x15xf32>
    %78 = tpu.matmul %75, %77, %cst_30 {dimension_numbers = #tpu.dot_dimension_numbers<[1], [0], [0], [1], [0, 0, 1, 1], [], []>} : vector<15x8xf32>, vector<8x15xf32>, vector<15x15xf32> -> vector<15x15xf32>
    %79 = arith.addf %78, %2 : vector<15x15xf32>
    %cst_31 = arith.constant dense<0xFF800000> : vector<15xf32>
    %80 = vector.multi_reduction <maximumf>, %79, %cst_31 [1] : vector<15x15xf32> to vector<15xf32>
    %81 = vector.shape_cast %80 : vector<15xf32> to vector<15x1xf32>
    %82 = vector.broadcast %81 : vector<15x1xf32> to vector<15x15xf32>
    %83 = arith.subf %79, %82 : vector<15x15xf32>
    %84 = math.exp %83 : vector<15x15xf32>
    %cst_32 = arith.constant dense<0.000000e+00> : vector<15xf32>
    %85 = vector.multi_reduction <add>, %84, %cst_32 [1] : vector<15x15xf32> to vector<15xf32>
    %86 = vector.shape_cast %85 : vector<15xf32> to vector<15x1xf32>
    %87 = tpu.reciprocal %86 : vector<15x1xf32> -> vector<15x1xf32>
    %88 = vector.broadcast %87 : vector<15x1xf32> to vector<15x15xf32>
    %89 = arith.mulf %84, %88 : vector<15x15xf32>
    %90 = vector.extract_strided_slice %40 {offsets = [0, 16], sizes = [15, 8], strides = [1, 1]} : vector<15x32xf32> to vector<15x8xf32>
    %cst_33 = arith.constant dense<0.000000e+00> : vector<15x8xf32>
    %91 = tpu.matmul %89, %90, %cst_33 {dimension_numbers = #tpu.dot_dimension_numbers<[1], [0], [0], [1], [0, 0, 1, 1], [], []>} : vector<15x15xf32>, vector<15x8xf32>, vector<15x8xf32> -> vector<15x8xf32>
    %92 = vector.extract_strided_slice %38 {offsets = [0, 24], sizes = [15, 8], strides = [1, 1]} : vector<15x32xf32> to vector<15x8xf32>
    %93 = vector.extract_strided_slice %39 {offsets = [0, 24], sizes = [15, 8], strides = [1, 1]} : vector<15x32xf32> to vector<15x8xf32>
    %94 = tpu.transpose %93, [1, 0] : vector<15x8xf32> -> vector<8x15xf32>
    %cst_34 = arith.constant dense<0.000000e+00> : vector<15x15xf32>
    %95 = tpu.matmul %92, %94, %cst_34 {dimension_numbers = #tpu.dot_dimension_numbers<[1], [0], [0], [1], [0, 0, 1, 1], [], []>} : vector<15x8xf32>, vector<8x15xf32>, vector<15x15xf32> -> vector<15x15xf32>
    %96 = arith.addf %95, %2 : vector<15x15xf32>
    %cst_35 = arith.constant dense<0xFF800000> : vector<15xf32>
    %97 = vector.multi_reduction <maximumf>, %96, %cst_35 [1] : vector<15x15xf32> to vector<15xf32>
    %98 = vector.shape_cast %97 : vector<15xf32> to vector<15x1xf32>
    %99 = vector.broadcast %98 : vector<15x1xf32> to vector<15x15xf32>
    %100 = arith.subf %96, %99 : vector<15x15xf32>
    %101 = math.exp %100 : vector<15x15xf32>
    %cst_36 = arith.constant dense<0.000000e+00> : vector<15xf32>
    %102 = vector.multi_reduction <add>, %101, %cst_36 [1] : vector<15x15xf32> to vector<15xf32>
    %103 = vector.shape_cast %102 : vector<15xf32> to vector<15x1xf32>
    %104 = tpu.reciprocal %103 : vector<15x1xf32> -> vector<15x1xf32>
    %105 = vector.broadcast %104 : vector<15x1xf32> to vector<15x15xf32>
    %106 = arith.mulf %101, %105 : vector<15x15xf32>
    %107 = vector.extract_strided_slice %40 {offsets = [0, 24], sizes = [15, 8], strides = [1, 1]} : vector<15x32xf32> to vector<15x8xf32>
    %cst_37 = arith.constant dense<0.000000e+00> : vector<15x8xf32>
    %108 = tpu.matmul %106, %107, %cst_37 {dimension_numbers = #tpu.dot_dimension_numbers<[1], [0], [0], [1], [0, 0, 1, 1], [], []>} : vector<15x15xf32>, vector<15x8xf32>, vector<15x8xf32> -> vector<15x8xf32>
    %109 = tpu.concatenate %57, %74, %91, %108 in 1 : vector<15x8xf32>, vector<15x8xf32>, vector<15x8xf32>, vector<15x8xf32> -> vector<15x32xf32>
    %c0_38 = arith.constant 0 : index
    %c0_39 = arith.constant 0 : index
    %c0_40 = arith.constant 0 : index
    %110 = vector.load %arg8[%c0_38, %c0_39, %c0_40] : memref<2x32x32xf32, #tpu.memory_space<vmem>>, vector<1x32x32xf32>
    %111 = vector.shape_cast %110 : vector<1x32x32xf32> to vector<32x32xf32>
    %cst_41 = arith.constant dense<0.000000e+00> : vector<15x32xf32>
    %112 = tpu.matmul %109, %111, %cst_41 {dimension_numbers = #tpu.dot_dimension_numbers<[1], [0], [0], [1], [0, 0, 1, 1], [], []>} : vector<15x32xf32>, vector<32x32xf32>, vector<15x32xf32> -> vector<15x32xf32>
    %c0_42 = arith.constant 0 : index
    %c0_43 = arith.constant 0 : index
    %c0_44 = arith.constant 0 : index
    %113 = vector.load %arg9[%c0_42, %c0_43, %c0_44] : memref<2x1x32xf32, #tpu.memory_space<vmem>>, vector<1x1x32xf32>
    %114 = vector.shape_cast %113 : vector<1x1x32xf32> to vector<1x32xf32>
    %115 = vector.broadcast %114 : vector<1x32xf32> to vector<15x32xf32>
    %116 = arith.addf %112, %115 : vector<15x32xf32>
    %117 = arith.addf %1, %116 : vector<15x32xf32>
    %c0_45 = arith.constant 0 : index
    %c0_46 = arith.constant 0 : index
    %c0_47 = arith.constant 0 : index
    %118 = vector.load %arg10[%c0_45, %c0_46, %c0_47] : memref<2x1x32xf32, #tpu.memory_space<vmem>>, vector<1x1x32xf32>
    %119 = vector.shape_cast %118 : vector<1x1x32xf32> to vector<1x32xf32>
    %c0_48 = arith.constant 0 : index
    %c0_49 = arith.constant 0 : index
    %c0_50 = arith.constant 0 : index
    %120 = vector.load %arg11[%c0_48, %c0_49, %c0_50] : memref<2x1x32xf32, #tpu.memory_space<vmem>>, vector<1x1x32xf32>
    %121 = vector.shape_cast %120 : vector<1x1x32xf32> to vector<1x32xf32>
    %cst_51 = arith.constant dense<0.000000e+00> : vector<15xf32>
    %122 = vector.multi_reduction <add>, %117, %cst_51 [1] : vector<15x32xf32> to vector<15xf32>
    %123 = vector.shape_cast %122 : vector<15xf32> to vector<15x1xf32>
    %cst_52 = arith.constant 3.200000e+01 : f32
    %124 = vector.broadcast %cst_52 : f32 to vector<15x1xf32>
    %125 = arith.divf %123, %124 : vector<15x1xf32>
    %126 = vector.broadcast %125 : vector<15x1xf32> to vector<15x32xf32>
    %127 = arith.subf %117, %126 : vector<15x32xf32>
    %128 = arith.mulf %127, %127 : vector<15x32xf32>
    %cst_53 = arith.constant dense<0.000000e+00> : vector<15xf32>
    %129 = vector.multi_reduction <add>, %128, %cst_53 [1] : vector<15x32xf32> to vector<15xf32>
    %130 = vector.shape_cast %129 : vector<15xf32> to vector<15x1xf32>
    %cst_54 = arith.constant 3.200000e+01 : f32
    %131 = vector.broadcast %cst_54 : f32 to vector<15x1xf32>
    %132 = arith.divf %130, %131 : vector<15x1xf32>
    %133 = vector.broadcast %125 : vector<15x1xf32> to vector<15x32xf32>
    %134 = arith.subf %117, %133 : vector<15x32xf32>
    %cst_55 = arith.constant 9.99999974E-6 : f32
    %135 = vector.broadcast %cst_55 : f32 to vector<15x1xf32>
    %136 = arith.addf %132, %135 : vector<15x1xf32>
    %137 = math.rsqrt %136 : vector<15x1xf32>
    %138 = vector.broadcast %137 : vector<15x1xf32> to vector<15x32xf32>
    %139 = arith.mulf %134, %138 : vector<15x32xf32>
    %140 = vector.broadcast %119 : vector<1x32xf32> to vector<15x32xf32>
    %141 = arith.mulf %139, %140 : vector<15x32xf32>
    %142 = vector.broadcast %121 : vector<1x32xf32> to vector<15x32xf32>
    %143 = arith.addf %141, %142 : vector<15x32xf32>
    %c0_56 = arith.constant 0 : index
    %c0_57 = arith.constant 0 : index
    %c0_58 = arith.constant 0 : index
    %144 = vector.load %arg12[%c0_56, %c0_57, %c0_58] : memref<2x32x128xf32, #tpu.memory_space<vmem>>, vector<1x32x128xf32>
    %145 = vector.shape_cast %144 : vector<1x32x128xf32> to vector<32x128xf32>
    %cst_59 = arith.constant dense<0.000000e+00> : vector<15x128xf32>
    %146 = tpu.matmul %143, %145, %cst_59 {dimension_numbers = #tpu.dot_dimension_numbers<[1], [0], [0], [1], [0, 0, 1, 1], [], []>} : vector<15x32xf32>, vector<32x128xf32>, vector<15x128xf32> -> vector<15x128xf32>
    %c0_60 = arith.constant 0 : index
    %c0_61 = arith.constant 0 : index
    %c0_62 = arith.constant 0 : index
    %147 = vector.load %arg13[%c0_60, %c0_61, %c0_62] : memref<2x1x128xf32, #tpu.memory_space<vmem>>, vector<1x1x128xf32>
    %148 = vector.shape_cast %147 : vector<1x1x128xf32> to vector<1x128xf32>
    %149 = vector.broadcast %148 : vector<1x128xf32> to vector<15x128xf32>
    %150 = arith.addf %146, %149 : vector<15x128xf32>
    %cst_63 = arith.constant 5.000000e-01 : f32
    %151 = vector.broadcast %cst_63 : f32 to vector<15x128xf32>
    %152 = arith.mulf %151, %150 : vector<15x128xf32>
    %cst_64 = arith.constant 0.707106769 : f32
    %153 = vector.broadcast %cst_64 : f32 to vector<15x128xf32>
    %154 = arith.mulf %150, %153 : vector<15x128xf32>
    %155 = math.erf %154 : vector<15x128xf32>
    %cst_65 = arith.constant 1.000000e+00 : f32
    %156 = vector.broadcast %cst_65 : f32 to vector<15x128xf32>
    %157 = arith.addf %156, %155 : vector<15x128xf32>
    %158 = arith.mulf %152, %157 : vector<15x128xf32>
    %c0_66 = arith.constant 0 : index
    %c0_67 = arith.constant 0 : index
    %c0_68 = arith.constant 0 : index
    %159 = vector.load %arg14[%c0_66, %c0_67, %c0_68] : memref<2x128x32xf32, #tpu.memory_space<vmem>>, vector<1x128x32xf32>
    %160 = vector.shape_cast %159 : vector<1x128x32xf32> to vector<128x32xf32>
    %cst_69 = arith.constant dense<0.000000e+00> : vector<15x32xf32>
    %161 = tpu.matmul %158, %160, %cst_69 {dimension_numbers = #tpu.dot_dimension_numbers<[1], [0], [0], [1], [0, 0, 1, 1], [], []>} : vector<15x128xf32>, vector<128x32xf32>, vector<15x32xf32> -> vector<15x32xf32>
    %162 = arith.addf %117, %161 : vector<15x32xf32>
    %c0_70 = arith.constant 0 : index
    %c0_71 = arith.constant 0 : index
    %c0_72 = arith.constant 0 : index
    %163 = vector.load %arg15[%c0_70, %c0_71, %c0_72] : memref<2x1x32xf32, #tpu.memory_space<vmem>>, vector<1x1x32xf32>
    %164 = vector.shape_cast %163 : vector<1x1x32xf32> to vector<1x32xf32>
    %165 = vector.broadcast %164 : vector<1x32xf32> to vector<15x32xf32>
    %166 = arith.addf %162, %165 : vector<15x32xf32>
    %c1 = arith.constant 1 : index
    %c0_73 = arith.constant 0 : index
    %c0_74 = arith.constant 0 : index
    %167 = vector.load %arg4[%c1, %c0_73, %c0_74] : memref<2x1x32xf32, #tpu.memory_space<vmem>>, vector<1x1x32xf32>
    %168 = vector.shape_cast %167 : vector<1x1x32xf32> to vector<1x32xf32>
    %c1_75 = arith.constant 1 : index
    %c0_76 = arith.constant 0 : index
    %c0_77 = arith.constant 0 : index
    %169 = vector.load %arg5[%c1_75, %c0_76, %c0_77] : memref<2x1x32xf32, #tpu.memory_space<vmem>>, vector<1x1x32xf32>
    %170 = vector.shape_cast %169 : vector<1x1x32xf32> to vector<1x32xf32>
    %cst_78 = arith.constant dense<0.000000e+00> : vector<15xf32>
    %171 = vector.multi_reduction <add>, %166, %cst_78 [1] : vector<15x32xf32> to vector<15xf32>
    %172 = vector.shape_cast %171 : vector<15xf32> to vector<15x1xf32>
    %cst_79 = arith.constant 3.200000e+01 : f32
    %173 = vector.broadcast %cst_79 : f32 to vector<15x1xf32>
    %174 = arith.divf %172, %173 : vector<15x1xf32>
    %175 = vector.broadcast %174 : vector<15x1xf32> to vector<15x32xf32>
    %176 = arith.subf %166, %175 : vector<15x32xf32>
    %177 = arith.mulf %176, %176 : vector<15x32xf32>
    %cst_80 = arith.constant dense<0.000000e+00> : vector<15xf32>
    %178 = vector.multi_reduction <add>, %177, %cst_80 [1] : vector<15x32xf32> to vector<15xf32>
    %179 = vector.shape_cast %178 : vector<15xf32> to vector<15x1xf32>
    %cst_81 = arith.constant 3.200000e+01 : f32
    %180 = vector.broadcast %cst_81 : f32 to vector<15x1xf32>
    %181 = arith.divf %179, %180 : vector<15x1xf32>
    %182 = vector.broadcast %174 : vector<15x1xf32> to vector<15x32xf32>
    %183 = arith.subf %166, %182 : vector<15x32xf32>
    %cst_82 = arith.constant 9.99999974E-6 : f32
    %184 = vector.broadcast %cst_82 : f32 to vector<15x1xf32>
    %185 = arith.addf %181, %184 : vector<15x1xf32>
    %186 = math.rsqrt %185 : vector<15x1xf32>
    %187 = vector.broadcast %186 : vector<15x1xf32> to vector<15x32xf32>
    %188 = arith.mulf %183, %187 : vector<15x32xf32>
    %189 = vector.broadcast %168 : vector<1x32xf32> to vector<15x32xf32>
    %190 = arith.mulf %188, %189 : vector<15x32xf32>
    %191 = vector.broadcast %170 : vector<1x32xf32> to vector<15x32xf32>
    %192 = arith.addf %190, %191 : vector<15x32xf32>
    %c1_83 = arith.constant 1 : index
    %c0_84 = arith.constant 0 : index
    %c0_85 = arith.constant 0 : index
    %193 = vector.load %arg6[%c1_83, %c0_84, %c0_85] : memref<2x32x96xf32, #tpu.memory_space<vmem>>, vector<1x32x96xf32>
    %194 = vector.shape_cast %193 : vector<1x32x96xf32> to vector<32x96xf32>
    %cst_86 = arith.constant dense<0.000000e+00> : vector<15x96xf32>
    %195 = tpu.matmul %192, %194, %cst_86 {dimension_numbers = #tpu.dot_dimension_numbers<[1], [0], [0], [1], [0, 0, 1, 1], [], []>} : vector<15x32xf32>, vector<32x96xf32>, vector<15x96xf32> -> vector<15x96xf32>
    %c1_87 = arith.constant 1 : index
    %c0_88 = arith.constant 0 : index
    %c0_89 = arith.constant 0 : index
    %196 = vector.load %arg7[%c1_87, %c0_88, %c0_89] : memref<2x1x96xf32, #tpu.memory_space<vmem>>, vector<1x1x96xf32>
    %197 = vector.shape_cast %196 : vector<1x1x96xf32> to vector<1x96xf32>
    %198 = vector.broadcast %197 : vector<1x96xf32> to vector<15x96xf32>
    %199 = arith.addf %195, %198 : vector<15x96xf32>
    %200 = vector.extract_strided_slice %199 {offsets = [0, 0], sizes = [15, 32], strides = [1, 1]} : vector<15x96xf32> to vector<15x32xf32>
    %cst_90 = arith.constant 0.353553385 : f32
    %201 = vector.broadcast %cst_90 : f32 to vector<15x32xf32>
    %202 = arith.mulf %200, %201 : vector<15x32xf32>
    %203 = vector.extract_strided_slice %199 {offsets = [0, 32], sizes = [15, 32], strides = [1, 1]} : vector<15x96xf32> to vector<15x32xf32>
    %204 = vector.extract_strided_slice %199 {offsets = [0, 64], sizes = [15, 32], strides = [1, 1]} : vector<15x96xf32> to vector<15x32xf32>
    %205 = vector.extract_strided_slice %202 {offsets = [0, 0], sizes = [15, 8], strides = [1, 1]} : vector<15x32xf32> to vector<15x8xf32>
    %206 = vector.extract_strided_slice %203 {offsets = [0, 0], sizes = [15, 8], strides = [1, 1]} : vector<15x32xf32> to vector<15x8xf32>
    %207 = tpu.transpose %206, [1, 0] : vector<15x8xf32> -> vector<8x15xf32>
    %cst_91 = arith.constant dense<0.000000e+00> : vector<15x15xf32>
    %208 = tpu.matmul %205, %207, %cst_91 {dimension_numbers = #tpu.dot_dimension_numbers<[1], [0], [0], [1], [0, 0, 1, 1], [], []>} : vector<15x8xf32>, vector<8x15xf32>, vector<15x15xf32> -> vector<15x15xf32>
    %209 = arith.addf %208, %2 : vector<15x15xf32>
    %cst_92 = arith.constant dense<0xFF800000> : vector<15xf32>
    %210 = vector.multi_reduction <maximumf>, %209, %cst_92 [1] : vector<15x15xf32> to vector<15xf32>
    %211 = vector.shape_cast %210 : vector<15xf32> to vector<15x1xf32>
    %212 = vector.broadcast %211 : vector<15x1xf32> to vector<15x15xf32>
    %213 = arith.subf %209, %212 : vector<15x15xf32>
    %214 = math.exp %213 : vector<15x15xf32>
    %cst_93 = arith.constant dense<0.000000e+00> : vector<15xf32>
    %215 = vector.multi_reduction <add>, %214, %cst_93 [1] : vector<15x15xf32> to vector<15xf32>
    %216 = vector.shape_cast %215 : vector<15xf32> to vector<15x1xf32>
    %217 = tpu.reciprocal %216 : vector<15x1xf32> -> vector<15x1xf32>
    %218 = vector.broadcast %217 : vector<15x1xf32> to vector<15x15xf32>
    %219 = arith.mulf %214, %218 : vector<15x15xf32>
    %220 = vector.extract_strided_slice %204 {offsets = [0, 0], sizes = [15, 8], strides = [1, 1]} : vector<15x32xf32> to vector<15x8xf32>
    %cst_94 = arith.constant dense<0.000000e+00> : vector<15x8xf32>
    %221 = tpu.matmul %219, %220, %cst_94 {dimension_numbers = #tpu.dot_dimension_numbers<[1], [0], [0], [1], [0, 0, 1, 1], [], []>} : vector<15x15xf32>, vector<15x8xf32>, vector<15x8xf32> -> vector<15x8xf32>
    %222 = vector.extract_strided_slice %202 {offsets = [0, 8], sizes = [15, 8], strides = [1, 1]} : vector<15x32xf32> to vector<15x8xf32>
    %223 = vector.extract_strided_slice %203 {offsets = [0, 8], sizes = [15, 8], strides = [1, 1]} : vector<15x32xf32> to vector<15x8xf32>
    %224 = tpu.transpose %223, [1, 0] : vector<15x8xf32> -> vector<8x15xf32>
    %cst_95 = arith.constant dense<0.000000e+00> : vector<15x15xf32>
    %225 = tpu.matmul %222, %224, %cst_95 {dimension_numbers = #tpu.dot_dimension_numbers<[1], [0], [0], [1], [0, 0, 1, 1], [], []>} : vector<15x8xf32>, vector<8x15xf32>, vector<15x15xf32> -> vector<15x15xf32>
    %226 = arith.addf %225, %2 : vector<15x15xf32>
    %cst_96 = arith.constant dense<0xFF800000> : vector<15xf32>
    %227 = vector.multi_reduction <maximumf>, %226, %cst_96 [1] : vector<15x15xf32> to vector<15xf32>
    %228 = vector.shape_cast %227 : vector<15xf32> to vector<15x1xf32>
    %229 = vector.broadcast %228 : vector<15x1xf32> to vector<15x15xf32>
    %230 = arith.subf %226, %229 : vector<15x15xf32>
    %231 = math.exp %230 : vector<15x15xf32>
    %cst_97 = arith.constant dense<0.000000e+00> : vector<15xf32>
    %232 = vector.multi_reduction <add>, %231, %cst_97 [1] : vector<15x15xf32> to vector<15xf32>
    %233 = vector.shape_cast %232 : vector<15xf32> to vector<15x1xf32>
    %234 = tpu.reciprocal %233 : vector<15x1xf32> -> vector<15x1xf32>
    %235 = vector.broadcast %234 : vector<15x1xf32> to vector<15x15xf32>
    %236 = arith.mulf %231, %235 : vector<15x15xf32>
    %237 = vector.extract_strided_slice %204 {offsets = [0, 8], sizes = [15, 8], strides = [1, 1]} : vector<15x32xf32> to vector<15x8xf32>
    %cst_98 = arith.constant dense<0.000000e+00> : vector<15x8xf32>
    %238 = tpu.matmul %236, %237, %cst_98 {dimension_numbers = #tpu.dot_dimension_numbers<[1], [0], [0], [1], [0, 0, 1, 1], [], []>} : vector<15x15xf32>, vector<15x8xf32>, vector<15x8xf32> -> vector<15x8xf32>
    %239 = vector.extract_strided_slice %202 {offsets = [0, 16], sizes = [15, 8], strides = [1, 1]} : vector<15x32xf32> to vector<15x8xf32>
    %240 = vector.extract_strided_slice %203 {offsets = [0, 16], sizes = [15, 8], strides = [1, 1]} : vector<15x32xf32> to vector<15x8xf32>
    %241 = tpu.transpose %240, [1, 0] : vector<15x8xf32> -> vector<8x15xf32>
    %cst_99 = arith.constant dense<0.000000e+00> : vector<15x15xf32>
    %242 = tpu.matmul %239, %241, %cst_99 {dimension_numbers = #tpu.dot_dimension_numbers<[1], [0], [0], [1], [0, 0, 1, 1], [], []>} : vector<15x8xf32>, vector<8x15xf32>, vector<15x15xf32> -> vector<15x15xf32>
    %243 = arith.addf %242, %2 : vector<15x15xf32>
    %cst_100 = arith.constant dense<0xFF800000> : vector<15xf32>
    %244 = vector.multi_reduction <maximumf>, %243, %cst_100 [1] : vector<15x15xf32> to vector<15xf32>
    %245 = vector.shape_cast %244 : vector<15xf32> to vector<15x1xf32>
    %246 = vector.broadcast %245 : vector<15x1xf32> to vector<15x15xf32>
    %247 = arith.subf %243, %246 : vector<15x15xf32>
    %248 = math.exp %247 : vector<15x15xf32>
    %cst_101 = arith.constant dense<0.000000e+00> : vector<15xf32>
    %249 = vector.multi_reduction <add>, %248, %cst_101 [1] : vector<15x15xf32> to vector<15xf32>
    %250 = vector.shape_cast %249 : vector<15xf32> to vector<15x1xf32>
    %251 = tpu.reciprocal %250 : vector<15x1xf32> -> vector<15x1xf32>
    %252 = vector.broadcast %251 : vector<15x1xf32> to vector<15x15xf32>
    %253 = arith.mulf %248, %252 : vector<15x15xf32>
    %254 = vector.extract_strided_slice %204 {offsets = [0, 16], sizes = [15, 8], strides = [1, 1]} : vector<15x32xf32> to vector<15x8xf32>
    %cst_102 = arith.constant dense<0.000000e+00> : vector<15x8xf32>
    %255 = tpu.matmul %253, %254, %cst_102 {dimension_numbers = #tpu.dot_dimension_numbers<[1], [0], [0], [1], [0, 0, 1, 1], [], []>} : vector<15x15xf32>, vector<15x8xf32>, vector<15x8xf32> -> vector<15x8xf32>
    %256 = vector.extract_strided_slice %202 {offsets = [0, 24], sizes = [15, 8], strides = [1, 1]} : vector<15x32xf32> to vector<15x8xf32>
    %257 = vector.extract_strided_slice %203 {offsets = [0, 24], sizes = [15, 8], strides = [1, 1]} : vector<15x32xf32> to vector<15x8xf32>
    %258 = tpu.transpose %257, [1, 0] : vector<15x8xf32> -> vector<8x15xf32>
    %cst_103 = arith.constant dense<0.000000e+00> : vector<15x15xf32>
    %259 = tpu.matmul %256, %258, %cst_103 {dimension_numbers = #tpu.dot_dimension_numbers<[1], [0], [0], [1], [0, 0, 1, 1], [], []>} : vector<15x8xf32>, vector<8x15xf32>, vector<15x15xf32> -> vector<15x15xf32>
    %260 = arith.addf %259, %2 : vector<15x15xf32>
    %cst_104 = arith.constant dense<0xFF800000> : vector<15xf32>
    %261 = vector.multi_reduction <maximumf>, %260, %cst_104 [1] : vector<15x15xf32> to vector<15xf32>
    %262 = vector.shape_cast %261 : vector<15xf32> to vector<15x1xf32>
    %263 = vector.broadcast %262 : vector<15x1xf32> to vector<15x15xf32>
    %264 = arith.subf %260, %263 : vector<15x15xf32>
    %265 = math.exp %264 : vector<15x15xf32>
    %cst_105 = arith.constant dense<0.000000e+00> : vector<15xf32>
    %266 = vector.multi_reduction <add>, %265, %cst_105 [1] : vector<15x15xf32> to vector<15xf32>
    %267 = vector.shape_cast %266 : vector<15xf32> to vector<15x1xf32>
    %268 = tpu.reciprocal %267 : vector<15x1xf32> -> vector<15x1xf32>
    %269 = vector.broadcast %268 : vector<15x1xf32> to vector<15x15xf32>
    %270 = arith.mulf %265, %269 : vector<15x15xf32>
    %271 = vector.extract_strided_slice %204 {offsets = [0, 24], sizes = [15, 8], strides = [1, 1]} : vector<15x32xf32> to vector<15x8xf32>
    %cst_106 = arith.constant dense<0.000000e+00> : vector<15x8xf32>
    %272 = tpu.matmul %270, %271, %cst_106 {dimension_numbers = #tpu.dot_dimension_numbers<[1], [0], [0], [1], [0, 0, 1, 1], [], []>} : vector<15x15xf32>, vector<15x8xf32>, vector<15x8xf32> -> vector<15x8xf32>
    %273 = tpu.concatenate %221, %238, %255, %272 in 1 : vector<15x8xf32>, vector<15x8xf32>, vector<15x8xf32>, vector<15x8xf32> -> vector<15x32xf32>
    %c1_107 = arith.constant 1 : index
    %c0_108 = arith.constant 0 : index
    %c0_109 = arith.constant 0 : index
    %274 = vector.load %arg8[%c1_107, %c0_108, %c0_109] : memref<2x32x32xf32, #tpu.memory_space<vmem>>, vector<1x32x32xf32>
    %275 = vector.shape_cast %274 : vector<1x32x32xf32> to vector<32x32xf32>
    %cst_110 = arith.constant dense<0.000000e+00> : vector<15x32xf32>
    %276 = tpu.matmul %273, %275, %cst_110 {dimension_numbers = #tpu.dot_dimension_numbers<[1], [0], [0], [1], [0, 0, 1, 1], [], []>} : vector<15x32xf32>, vector<32x32xf32>, vector<15x32xf32> -> vector<15x32xf32>
    %c1_111 = arith.constant 1 : index
    %c0_112 = arith.constant 0 : index
    %c0_113 = arith.constant 0 : index
    %277 = vector.load %arg9[%c1_111, %c0_112, %c0_113] : memref<2x1x32xf32, #tpu.memory_space<vmem>>, vector<1x1x32xf32>
    %278 = vector.shape_cast %277 : vector<1x1x32xf32> to vector<1x32xf32>
    %279 = vector.broadcast %278 : vector<1x32xf32> to vector<15x32xf32>
    %280 = arith.addf %276, %279 : vector<15x32xf32>
    %281 = arith.addf %166, %280 : vector<15x32xf32>
    %c1_114 = arith.constant 1 : index
    %c0_115 = arith.constant 0 : index
    %c0_116 = arith.constant 0 : index
    %282 = vector.load %arg10[%c1_114, %c0_115, %c0_116] : memref<2x1x32xf32, #tpu.memory_space<vmem>>, vector<1x1x32xf32>
    %283 = vector.shape_cast %282 : vector<1x1x32xf32> to vector<1x32xf32>
    %c1_117 = arith.constant 1 : index
    %c0_118 = arith.constant 0 : index
    %c0_119 = arith.constant 0 : index
    %284 = vector.load %arg11[%c1_117, %c0_118, %c0_119] : memref<2x1x32xf32, #tpu.memory_space<vmem>>, vector<1x1x32xf32>
    %285 = vector.shape_cast %284 : vector<1x1x32xf32> to vector<1x32xf32>
    %cst_120 = arith.constant dense<0.000000e+00> : vector<15xf32>
    %286 = vector.multi_reduction <add>, %281, %cst_120 [1] : vector<15x32xf32> to vector<15xf32>
    %287 = vector.shape_cast %286 : vector<15xf32> to vector<15x1xf32>
    %cst_121 = arith.constant 3.200000e+01 : f32
    %288 = vector.broadcast %cst_121 : f32 to vector<15x1xf32>
    %289 = arith.divf %287, %288 : vector<15x1xf32>
    %290 = vector.broadcast %289 : vector<15x1xf32> to vector<15x32xf32>
    %291 = arith.subf %281, %290 : vector<15x32xf32>
    %292 = arith.mulf %291, %291 : vector<15x32xf32>
    %cst_122 = arith.constant dense<0.000000e+00> : vector<15xf32>
    %293 = vector.multi_reduction <add>, %292, %cst_122 [1] : vector<15x32xf32> to vector<15xf32>
    %294 = vector.shape_cast %293 : vector<15xf32> to vector<15x1xf32>
    %cst_123 = arith.constant 3.200000e+01 : f32
    %295 = vector.broadcast %cst_123 : f32 to vector<15x1xf32>
    %296 = arith.divf %294, %295 : vector<15x1xf32>
    %297 = vector.broadcast %289 : vector<15x1xf32> to vector<15x32xf32>
    %298 = arith.subf %281, %297 : vector<15x32xf32>
    %cst_124 = arith.constant 9.99999974E-6 : f32
    %299 = vector.broadcast %cst_124 : f32 to vector<15x1xf32>
    %300 = arith.addf %296, %299 : vector<15x1xf32>
    %301 = math.rsqrt %300 : vector<15x1xf32>
    %302 = vector.broadcast %301 : vector<15x1xf32> to vector<15x32xf32>
    %303 = arith.mulf %298, %302 : vector<15x32xf32>
    %304 = vector.broadcast %283 : vector<1x32xf32> to vector<15x32xf32>
    %305 = arith.mulf %303, %304 : vector<15x32xf32>
    %306 = vector.broadcast %285 : vector<1x32xf32> to vector<15x32xf32>
    %307 = arith.addf %305, %306 : vector<15x32xf32>
    %c1_125 = arith.constant 1 : index
    %c0_126 = arith.constant 0 : index
    %c0_127 = arith.constant 0 : index
    %308 = vector.load %arg12[%c1_125, %c0_126, %c0_127] : memref<2x32x128xf32, #tpu.memory_space<vmem>>, vector<1x32x128xf32>
    %309 = vector.shape_cast %308 : vector<1x32x128xf32> to vector<32x128xf32>
    %cst_128 = arith.constant dense<0.000000e+00> : vector<15x128xf32>
    %310 = tpu.matmul %307, %309, %cst_128 {dimension_numbers = #tpu.dot_dimension_numbers<[1], [0], [0], [1], [0, 0, 1, 1], [], []>} : vector<15x32xf32>, vector<32x128xf32>, vector<15x128xf32> -> vector<15x128xf32>
    %c1_129 = arith.constant 1 : index
    %c0_130 = arith.constant 0 : index
    %c0_131 = arith.constant 0 : index
    %311 = vector.load %arg13[%c1_129, %c0_130, %c0_131] : memref<2x1x128xf32, #tpu.memory_space<vmem>>, vector<1x1x128xf32>
    %312 = vector.shape_cast %311 : vector<1x1x128xf32> to vector<1x128xf32>
    %313 = vector.broadcast %312 : vector<1x128xf32> to vector<15x128xf32>
    %314 = arith.addf %310, %313 : vector<15x128xf32>
    %cst_132 = arith.constant 5.000000e-01 : f32
    %315 = vector.broadcast %cst_132 : f32 to vector<15x128xf32>
    %316 = arith.mulf %315, %314 : vector<15x128xf32>
    %cst_133 = arith.constant 0.707106769 : f32
    %317 = vector.broadcast %cst_133 : f32 to vector<15x128xf32>
    %318 = arith.mulf %314, %317 : vector<15x128xf32>
    %319 = math.erf %318 : vector<15x128xf32>
    %cst_134 = arith.constant 1.000000e+00 : f32
    %320 = vector.broadcast %cst_134 : f32 to vector<15x128xf32>
    %321 = arith.addf %320, %319 : vector<15x128xf32>
    %322 = arith.mulf %316, %321 : vector<15x128xf32>
    %c1_135 = arith.constant 1 : index
    %c0_136 = arith.constant 0 : index
    %c0_137 = arith.constant 0 : index
    %323 = vector.load %arg14[%c1_135, %c0_136, %c0_137] : memref<2x128x32xf32, #tpu.memory_space<vmem>>, vector<1x128x32xf32>
    %324 = vector.shape_cast %323 : vector<1x128x32xf32> to vector<128x32xf32>
    %cst_138 = arith.constant dense<0.000000e+00> : vector<15x32xf32>
    %325 = tpu.matmul %322, %324, %cst_138 {dimension_numbers = #tpu.dot_dimension_numbers<[1], [0], [0], [1], [0, 0, 1, 1], [], []>} : vector<15x128xf32>, vector<128x32xf32>, vector<15x32xf32> -> vector<15x32xf32>
    %326 = arith.addf %281, %325 : vector<15x32xf32>
    %c1_139 = arith.constant 1 : index
    %c0_140 = arith.constant 0 : index
    %c0_141 = arith.constant 0 : index
    %327 = vector.load %arg15[%c1_139, %c0_140, %c0_141] : memref<2x1x32xf32, #tpu.memory_space<vmem>>, vector<1x1x32xf32>
    %328 = vector.shape_cast %327 : vector<1x1x32xf32> to vector<1x32xf32>
    %329 = vector.broadcast %328 : vector<1x32xf32> to vector<15x32xf32>
    %330 = arith.addf %326, %329 : vector<15x32xf32>
    %331 = vector.extract_strided_slice %330 {offsets = [3, 0], sizes = [12, 32], strides = [1, 1]} : vector<15x32xf32> to vector<12x32xf32>
    %c0_142 = arith.constant 0 : index
    %c0_143 = arith.constant 0 : index
    %332 = vector.load %arg16[%c0_142, %c0_143] : memref<1x32xf32, #tpu.memory_space<vmem>>, vector<1x32xf32>
    %c0_144 = arith.constant 0 : index
    %c0_145 = arith.constant 0 : index
    %333 = vector.load %arg17[%c0_144, %c0_145] : memref<1x32xf32, #tpu.memory_space<vmem>>, vector<1x32xf32>
    %cst_146 = arith.constant dense<0.000000e+00> : vector<12xf32>
    %334 = vector.multi_reduction <add>, %331, %cst_146 [1] : vector<12x32xf32> to vector<12xf32>
    %335 = vector.shape_cast %334 : vector<12xf32> to vector<12x1xf32>
    %cst_147 = arith.constant 3.200000e+01 : f32
    %336 = vector.broadcast %cst_147 : f32 to vector<12x1xf32>
    %337 = arith.divf %335, %336 : vector<12x1xf32>
    %338 = vector.broadcast %337 : vector<12x1xf32> to vector<12x32xf32>
    %339 = arith.subf %331, %338 : vector<12x32xf32>
    %340 = arith.mulf %339, %339 : vector<12x32xf32>
    %cst_148 = arith.constant dense<0.000000e+00> : vector<12xf32>
    %341 = vector.multi_reduction <add>, %340, %cst_148 [1] : vector<12x32xf32> to vector<12xf32>
    %342 = vector.shape_cast %341 : vector<12xf32> to vector<12x1xf32>
    %cst_149 = arith.constant 3.200000e+01 : f32
    %343 = vector.broadcast %cst_149 : f32 to vector<12x1xf32>
    %344 = arith.divf %342, %343 : vector<12x1xf32>
    %345 = vector.broadcast %337 : vector<12x1xf32> to vector<12x32xf32>
    %346 = arith.subf %331, %345 : vector<12x32xf32>
    %cst_150 = arith.constant 9.99999974E-6 : f32
    %347 = vector.broadcast %cst_150 : f32 to vector<12x1xf32>
    %348 = arith.addf %344, %347 : vector<12x1xf32>
    %349 = math.rsqrt %348 : vector<12x1xf32>
    %350 = vector.broadcast %349 : vector<12x1xf32> to vector<12x32xf32>
    %351 = arith.mulf %346, %350 : vector<12x32xf32>
    %352 = vector.broadcast %332 : vector<1x32xf32> to vector<12x32xf32>
    %353 = arith.mulf %351, %352 : vector<12x32xf32>
    %354 = vector.broadcast %333 : vector<1x32xf32> to vector<12x32xf32>
    %355 = arith.addf %353, %354 : vector<12x32xf32>
    %cst_151 = arith.constant 0.000000e+00 : f32
    %356 = vector.broadcast %cst_151 : f32 to vector<12x11xf32>
    %c0_152 = arith.constant 0 : index
    %c0_153 = arith.constant 0 : index
    %c0_154 = arith.constant 0 : index
    %357 = vector.load %arg3[%c0_152, %c0_153, %c0_154] : memref<7x12x11xf32, #tpu.memory_space<vmem>>, vector<1x12x11xf32>
    %358 = vector.shape_cast %357 : vector<1x12x11xf32> to vector<12x11xf32>
    %c0_155 = arith.constant 0 : index
    %c0_156 = arith.constant 0 : index
    %c0_157 = arith.constant 0 : index
    %359 = vector.load %arg18[%c0_155, %c0_156, %c0_157] : memref<7x32x11xf32, #tpu.memory_space<vmem>>, vector<1x32x11xf32>
    %360 = vector.shape_cast %359 : vector<1x32x11xf32> to vector<32x11xf32>
    %cst_158 = arith.constant dense<0.000000e+00> : vector<12x11xf32>
    %361 = tpu.matmul %355, %360, %cst_158 {dimension_numbers = #tpu.dot_dimension_numbers<[1], [0], [0], [1], [0, 0, 1, 1], [], []>} : vector<12x32xf32>, vector<32x11xf32>, vector<12x11xf32> -> vector<12x11xf32>
    %362 = arith.mulf %358, %361 : vector<12x11xf32>
    %363 = arith.addf %356, %362 : vector<12x11xf32>
    %c1_159 = arith.constant 1 : index
    %c0_160 = arith.constant 0 : index
    %c0_161 = arith.constant 0 : index
    %364 = vector.load %arg3[%c1_159, %c0_160, %c0_161] : memref<7x12x11xf32, #tpu.memory_space<vmem>>, vector<1x12x11xf32>
    %365 = vector.shape_cast %364 : vector<1x12x11xf32> to vector<12x11xf32>
    %c1_162 = arith.constant 1 : index
    %c0_163 = arith.constant 0 : index
    %c0_164 = arith.constant 0 : index
    %366 = vector.load %arg18[%c1_162, %c0_163, %c0_164] : memref<7x32x11xf32, #tpu.memory_space<vmem>>, vector<1x32x11xf32>
    %367 = vector.shape_cast %366 : vector<1x32x11xf32> to vector<32x11xf32>
    %cst_165 = arith.constant dense<0.000000e+00> : vector<12x11xf32>
    %368 = tpu.matmul %355, %367, %cst_165 {dimension_numbers = #tpu.dot_dimension_numbers<[1], [0], [0], [1], [0, 0, 1, 1], [], []>} : vector<12x32xf32>, vector<32x11xf32>, vector<12x11xf32> -> vector<12x11xf32>
    %369 = arith.mulf %365, %368 : vector<12x11xf32>
    %370 = arith.addf %363, %369 : vector<12x11xf32>
    %c2 = arith.constant 2 : index
    %c0_166 = arith.constant 0 : index
    %c0_167 = arith.constant 0 : index
    %371 = vector.load %arg3[%c2, %c0_166, %c0_167] : memref<7x12x11xf32, #tpu.memory_space<vmem>>, vector<1x12x11xf32>
    %372 = vector.shape_cast %371 : vector<1x12x11xf32> to vector<12x11xf32>
    %c2_168 = arith.constant 2 : index
    %c0_169 = arith.constant 0 : index
    %c0_170 = arith.constant 0 : index
    %373 = vector.load %arg18[%c2_168, %c0_169, %c0_170] : memref<7x32x11xf32, #tpu.memory_space<vmem>>, vector<1x32x11xf32>
    %374 = vector.shape_cast %373 : vector<1x32x11xf32> to vector<32x11xf32>
    %cst_171 = arith.constant dense<0.000000e+00> : vector<12x11xf32>
    %375 = tpu.matmul %355, %374, %cst_171 {dimension_numbers = #tpu.dot_dimension_numbers<[1], [0], [0], [1], [0, 0, 1, 1], [], []>} : vector<12x32xf32>, vector<32x11xf32>, vector<12x11xf32> -> vector<12x11xf32>
    %376 = arith.mulf %372, %375 : vector<12x11xf32>
    %377 = arith.addf %370, %376 : vector<12x11xf32>
    %c3 = arith.constant 3 : index
    %c0_172 = arith.constant 0 : index
    %c0_173 = arith.constant 0 : index
    %378 = vector.load %arg3[%c3, %c0_172, %c0_173] : memref<7x12x11xf32, #tpu.memory_space<vmem>>, vector<1x12x11xf32>
    %379 = vector.shape_cast %378 : vector<1x12x11xf32> to vector<12x11xf32>
    %c3_174 = arith.constant 3 : index
    %c0_175 = arith.constant 0 : index
    %c0_176 = arith.constant 0 : index
    %380 = vector.load %arg18[%c3_174, %c0_175, %c0_176] : memref<7x32x11xf32, #tpu.memory_space<vmem>>, vector<1x32x11xf32>
    %381 = vector.shape_cast %380 : vector<1x32x11xf32> to vector<32x11xf32>
    %cst_177 = arith.constant dense<0.000000e+00> : vector<12x11xf32>
    %382 = tpu.matmul %355, %381, %cst_177 {dimension_numbers = #tpu.dot_dimension_numbers<[1], [0], [0], [1], [0, 0, 1, 1], [], []>} : vector<12x32xf32>, vector<32x11xf32>, vector<12x11xf32> -> vector<12x11xf32>
    %383 = arith.mulf %379, %382 : vector<12x11xf32>
    %384 = arith.addf %377, %383 : vector<12x11xf32>
    %c4 = arith.constant 4 : index
    %c0_178 = arith.constant 0 : index
    %c0_179 = arith.constant 0 : index
    %385 = vector.load %arg3[%c4, %c0_178, %c0_179] : memref<7x12x11xf32, #tpu.memory_space<vmem>>, vector<1x12x11xf32>
    %386 = vector.shape_cast %385 : vector<1x12x11xf32> to vector<12x11xf32>
    %c4_180 = arith.constant 4 : index
    %c0_181 = arith.constant 0 : index
    %c0_182 = arith.constant 0 : index
    %387 = vector.load %arg18[%c4_180, %c0_181, %c0_182] : memref<7x32x11xf32, #tpu.memory_space<vmem>>, vector<1x32x11xf32>
    %388 = vector.shape_cast %387 : vector<1x32x11xf32> to vector<32x11xf32>
    %cst_183 = arith.constant dense<0.000000e+00> : vector<12x11xf32>
    %389 = tpu.matmul %355, %388, %cst_183 {dimension_numbers = #tpu.dot_dimension_numbers<[1], [0], [0], [1], [0, 0, 1, 1], [], []>} : vector<12x32xf32>, vector<32x11xf32>, vector<12x11xf32> -> vector<12x11xf32>
    %390 = arith.mulf %386, %389 : vector<12x11xf32>
    %391 = arith.addf %384, %390 : vector<12x11xf32>
    %c5 = arith.constant 5 : index
    %c0_184 = arith.constant 0 : index
    %c0_185 = arith.constant 0 : index
    %392 = vector.load %arg3[%c5, %c0_184, %c0_185] : memref<7x12x11xf32, #tpu.memory_space<vmem>>, vector<1x12x11xf32>
    %393 = vector.shape_cast %392 : vector<1x12x11xf32> to vector<12x11xf32>
    %c5_186 = arith.constant 5 : index
    %c0_187 = arith.constant 0 : index
    %c0_188 = arith.constant 0 : index
    %394 = vector.load %arg18[%c5_186, %c0_187, %c0_188] : memref<7x32x11xf32, #tpu.memory_space<vmem>>, vector<1x32x11xf32>
    %395 = vector.shape_cast %394 : vector<1x32x11xf32> to vector<32x11xf32>
    %cst_189 = arith.constant dense<0.000000e+00> : vector<12x11xf32>
    %396 = tpu.matmul %355, %395, %cst_189 {dimension_numbers = #tpu.dot_dimension_numbers<[1], [0], [0], [1], [0, 0, 1, 1], [], []>} : vector<12x32xf32>, vector<32x11xf32>, vector<12x11xf32> -> vector<12x11xf32>
    %397 = arith.mulf %393, %396 : vector<12x11xf32>
    %398 = arith.addf %391, %397 : vector<12x11xf32>
    %c6 = arith.constant 6 : index
    %c0_190 = arith.constant 0 : index
    %c0_191 = arith.constant 0 : index
    %399 = vector.load %arg3[%c6, %c0_190, %c0_191] : memref<7x12x11xf32, #tpu.memory_space<vmem>>, vector<1x12x11xf32>
    %400 = vector.shape_cast %399 : vector<1x12x11xf32> to vector<12x11xf32>
    %c6_192 = arith.constant 6 : index
    %c0_193 = arith.constant 0 : index
    %c0_194 = arith.constant 0 : index
    %401 = vector.load %arg18[%c6_192, %c0_193, %c0_194] : memref<7x32x11xf32, #tpu.memory_space<vmem>>, vector<1x32x11xf32>
    %402 = vector.shape_cast %401 : vector<1x32x11xf32> to vector<32x11xf32>
    %cst_195 = arith.constant dense<0.000000e+00> : vector<12x11xf32>
    %403 = tpu.matmul %355, %402, %cst_195 {dimension_numbers = #tpu.dot_dimension_numbers<[1], [0], [0], [1], [0, 0, 1, 1], [], []>} : vector<12x32xf32>, vector<32x11xf32>, vector<12x11xf32> -> vector<12x11xf32>
    %404 = arith.mulf %400, %403 : vector<12x11xf32>
    %405 = arith.addf %398, %404 : vector<12x11xf32>
    %c0_196 = arith.constant 0 : index
    %c0_197 = arith.constant 0 : index
    %c0_198 = arith.constant 0 : index
    %406 = vector.load %arg19[%c0_196, %c0_197, %c0_198] : memref<1x12x11xf32, #tpu.memory_space<vmem>>, vector<1x12x11xf32>
    %407 = vector.shape_cast %406 : vector<1x12x11xf32> to vector<12x11xf32>
    %408 = vector.shape_cast %405 : vector<12x11xf32> to vector<1x12x11xf32>
    tpu.vector_store %arg19[%c0_196, %c0_197, %c0_198], %408 {strides = array<i32>} : memref<1x12x11xf32, #tpu.memory_space<vmem>>, vector<1x12x11xf32>,
    return
  }
  func.func @transform_0(%arg0: i32) -> (i32, i32, i32) {
    %c0_i32 = arith.constant 0 : i32
    %c0_i32_0 = arith.constant 0 : i32
    %c0_i32_1 = arith.constant 0 : i32
    return %arg0, %c0_i32, %c0_i32_0 : i32, i32, i32
  }
  func.func @transform_1(%arg0: i32) -> (i32, i32) {
    %c0_i32 = arith.constant 0 : i32
    %c0_i32_0 = arith.constant 0 : i32
    %c0_i32_1 = arith.constant 0 : i32
    return %c0_i32, %c0_i32_0 : i32, i32
  }
  func.func @transform_2(%arg0: i32) -> (i32, i32, i32) {
    %c0_i32 = arith.constant 0 : i32
    %c0_i32_0 = arith.constant 0 : i32
    %c0_i32_1 = arith.constant 0 : i32
    %c0_i32_2 = arith.constant 0 : i32
    return %c0_i32, %c0_i32_0, %c0_i32_1 : i32, i32, i32
  }
  func.func @transform_3(%arg0: i32) -> (i32, i32, i32) {
    %c0_i32 = arith.constant 0 : i32
    %c0_i32_0 = arith.constant 0 : i32
    %c0_i32_1 = arith.constant 0 : i32
    %c0_i32_2 = arith.constant 0 : i32
    return %c0_i32, %c0_i32_0, %c0_i32_1 : i32, i32, i32
  }
  func.func @transform_4(%arg0: i32) -> (i32, i32, i32) {
    %c0_i32 = arith.constant 0 : i32
    %c0_i32_0 = arith.constant 0 : i32
    %c0_i32_1 = arith.constant 0 : i32
    %c0_i32_2 = arith.constant 0 : i32
    return %c0_i32, %c0_i32_0, %c0_i32_1 : i32, i32, i32
  }
  func.func @transform_5(%arg0: i32) -> (i32, i32, i32) {
    %c0_i32 = arith.constant 0 : i32
    %c0_i32_0 = arith.constant 0 : i32
    %c0_i32_1 = arith.constant 0 : i32
    %c0_i32_2 = arith.constant 0 : i32
    return %c0_i32, %c0_i32_0, %c0_i32_1 : i32, i32, i32
  }
  func.func @transform_6(%arg0: i32) -> (i32, i32, i32) {
    %c0_i32 = arith.constant 0 : i32
    %c0_i32_0 = arith.constant 0 : i32
    %c0_i32_1 = arith.constant 0 : i32
    %c0_i32_2 = arith.constant 0 : i32
    return %c0_i32, %c0_i32_0, %c0_i32_1 : i32, i32, i32
  }
  func.func @transform_7(%arg0: i32) -> (i32, i32, i32) {
    %c0_i32 = arith.constant 0 : i32
    %c0_i32_0 = arith.constant 0 : i32
    %c0_i32_1 = arith.constant 0 : i32
    %c0_i32_2 = arith.constant 0 : i32
    return %c0_i32, %c0_i32_0, %c0_i32_1 : i32, i32, i32
  }
  func.func @transform_8(%arg0: i32) -> (i32, i32, i32) {
    %c0_i32 = arith.constant 0 : i32
    %c0_i32_0 = arith.constant 0 : i32
    %c0_i32_1 = arith.constant 0 : i32
    %c0_i32_2 = arith.constant 0 : i32
    return %c0_i32, %c0_i32_0, %c0_i32_1 : i32, i32, i32
  }
  func.func @transform_9(%arg0: i32) -> (i32, i32, i32) {
    %c0_i32 = arith.constant 0 : i32
    %c0_i32_0 = arith.constant 0 : i32
    %c0_i32_1 = arith.constant 0 : i32
    %c0_i32_2 = arith.constant 0 : i32
    return %c0_i32, %c0_i32_0, %c0_i32_1 : i32, i32, i32
  }
  func.func @transform_10(%arg0: i32) -> (i32, i32, i32) {
    %c0_i32 = arith.constant 0 : i32
    %c0_i32_0 = arith.constant 0 : i32
    %c0_i32_1 = arith.constant 0 : i32
    %c0_i32_2 = arith.constant 0 : i32
    return %c0_i32, %c0_i32_0, %c0_i32_1 : i32, i32, i32
  }
  func.func @transform_11(%arg0: i32) -> (i32, i32, i32) {
    %c0_i32 = arith.constant 0 : i32
    %c0_i32_0 = arith.constant 0 : i32
    %c0_i32_1 = arith.constant 0 : i32
    %c0_i32_2 = arith.constant 0 : i32
    return %c0_i32, %c0_i32_0, %c0_i32_1 : i32, i32, i32
  }
  func.func @transform_12(%arg0: i32) -> (i32, i32, i32) {
    %c0_i32 = arith.constant 0 : i32
    %c0_i32_0 = arith.constant 0 : i32
    %c0_i32_1 = arith.constant 0 : i32
    %c0_i32_2 = arith.constant 0 : i32
    return %c0_i32, %c0_i32_0, %c0_i32_1 : i32, i32, i32
  }
  func.func @transform_13(%arg0: i32) -> (i32, i32, i32) {
    %c0_i32 = arith.constant 0 : i32
    %c0_i32_0 = arith.constant 0 : i32
    %c0_i32_1 = arith.constant 0 : i32
    %c0_i32_2 = arith.constant 0 : i32
    return %c0_i32, %c0_i32_0, %c0_i32_1 : i32, i32, i32
  }
  func.func @transform_14(%arg0: i32) -> (i32, i32, i32) {
    %c0_i32 = arith.constant 0 : i32
    %c0_i32_0 = arith.constant 0 : i32
    %c0_i32_1 = arith.constant 0 : i32
    %c0_i32_2 = arith.constant 0 : i32
    return %c0_i32, %c0_i32_0, %c0_i32_1 : i32, i32, i32
  }
  func.func @transform_15(%arg0: i32) -> (i32, i32) {
    %c0_i32 = arith.constant 0 : i32
    %c0_i32_0 = arith.constant 0 : i32
    %c0_i32_1 = arith.constant 0 : i32
    return %c0_i32, %c0_i32_0 : i32, i32
  }
  func.func @transform_16(%arg0: i32) -> (i32, i32) {
    %c0_i32 = arith.constant 0 : i32
    %c0_i32_0 = arith.constant 0 : i32
    %c0_i32_1 = arith.constant 0 : i32
    return %c0_i32, %c0_i32_0 : i32, i32
  }
  func.func @transform_17(%arg0: i32) -> (i32, i32, i32) {
    %c0_i32 = arith.constant 0 : i32
    %c0_i32_0 = arith.constant 0 : i32
    %c0_i32_1 = arith.constant 0 : i32
    %c0_i32_2 = arith.constant 0 : i32
    return %c0_i32, %c0_i32_0, %c0_i32_1 : i32, i32, i32
  }
  func.func @transform_18(%arg0: i32) -> (i32, i32, i32) {
    %c0_i32 = arith.constant 0 : i32
    %c0_i32_0 = arith.constant 0 : i32
    %c0_i32_1 = arith.constant 0 : i32
    return %arg0, %c0_i32, %c0_i32_0 : i32, i32, i32
  }
}

</mosaic_0001>

<bundles_post_ra>
// kernel: tpu_custom_call.1
= control target key start
LH: loop header
LB: loop body
LE: loop exit
PB: predicated region body
PF: predicated region fallthrough
CT: control target
= control target key end

     0   :  { %s5217_s27 = smov 0   ;;  %s5963_s0 = inlined_call_operand.vmem [shape: f32[2,15,32], index: 0, kind: input, shape index: {}]   ;;  %s5964_s1 = inlined_call_operand.vmem [shape: f32[15,15], index: 1, kind: input, shape index: {}]   ;;  %s5965_s2 = inlined_call_operand.vmem [shape: f32[7,12,11], index: 2, kind: input, shape index: {}]   ;;  %s5966_s3 = inlined_call_operand.vmem [shape: f32[2,1,32], index: 3, kind: input, shape index: {}]   ;;  %s5967_s4 = inlined_call_operand.vmem [shape: f32[2,1,32], index: 4, kind: input, shape index: {}]   ;;  %s5968_s5 = inlined_call_operand.vmem [shape: f32[2,32,96], index: 5, kind: input, shape index: {}]   ;;  %s5969_s6 = inlined_call_operand.vmem [shape: f32[2,1,96], index: 6, kind: input, shape index: {}]   ;;  %s5970_s7 = inlined_call_operand.vmem [shape: f32[2,32,32], index: 7, kind: input, shape index: {}]   ;;  %s5971_s8 = inlined_call_operand.vmem [shape: f32[2,1,32], index: 8, kind: input, shape index: {}]   ;;  %s5972_s9 = inlined_call_operand.vmem [shape: f32[2,1,32], index: 9, kind: input, shape index: {}]   ;;  %s5973_s10 = inlined_call_operand.vmem [shape: f32[2,1,32], index: 10, kind: input, shape index: {}]   ;;  %s5974_s11 = inlined_call_operand.vmem [shape: f32[2,32,128], index: 11, kind: input, shape index: {}]   ;;  %s5975_s12 = inlined_call_operand.vmem [shape: f32[2,1,128], index: 12, kind: input, shape index: {}]   ;;  %s5976_s13 = inlined_call_operand.vmem [shape: f32[2,128,32], index: 13, kind: input, shape index: {}]   ;;  %s5977_s14 = inlined_call_operand.vmem [shape: f32[2,1,32], index: 14, kind: input, shape index: {}]   ;;  %s5978_s15 = inlined_call_operand.vmem [shape: f32[1,32], index: 15, kind: input, shape index: {}]   ;;  %s5979_s16 = inlined_call_operand.vmem [shape: f32[1,32], index: 16, kind: input, shape index: {}]   ;;  %s5980_s17 = inlined_call_operand.vmem [shape: f32[7,32,11], index: 17, kind: input, shape index: {}]   ;;  %s5981_s18 = inlined_call_operand.vmem [shape: f32[2,12,11], index: 18, kind: output, shape index: {}]  }
   0x1   :  { %6003 = sst [smem:[#allocation2_spill]] %s5963_s0 }
   0x2   :  { %6004 = sst [smem:[#allocation3_spill]] %s5964_s1 }
   0x3   :  { %6005 = sst [smem:[#allocation4_spill]] %s5965_s2 }
   0x4 LB: > { %s3950_s28 = sadd.s32 4294967295, %s5105_s27   ;;  %p3954_p0 = scmp.ge.s32.totalorder %s5105_s27, 1  ;;  %s5105_s27 = sphi %s5217_s27, %s28_s27  }
   0x5   : > { %p512_p1 = scmp.lt.s32.totalorder %s5105_s27, 3 }
   0x7   : > { %p513_p2 = pnand %p3954_p0, %p512_p1 }
   0x8   : > { %p566_p3 = scmp.lt.s32.totalorder (!%p513_p2), %s3950_s28, 1  ;;  %vm582_vm0 = vcmask (!%p513_p2), 261120   ;;  %s6006_s19 = sld [smem:[#allocation2_spill]] (!%p513_p2)  ;;  %vm586_vm1 = vcmask (!%p513_p2), 260096   ;;  %v627_v14 = vld [vmem:[%s5968_s5] sm:$0xff] (!%p513_p2)  ;;  %v628_v15 = vld [vmem:[%s5968_s5 + $0x8] sm:$0xff] (!%p513_p2) }
   0x9   : > { %516 = sbr.rel (%p513_p2) target bundleno = 8337 (0x2091), region = 92  ;;  %v629_v16 = vld [vmem:[%s5968_s5 + $0x10] sm:$0xff] (!%p513_p2)  ;;  %v4638_v17 = vpack.c.bf16 (!%p513_p2), %v628_v15, %v627_v14  ;;  %v630_v18 = vld [vmem:[%s5968_s5 + $0x18] sm:$0xff] (!%p513_p2)  ;;  %v3959_v27 = vld [vmem:[%s5966_s3] ss:$0 sm:$0xff] (!%p513_p2)  ;;  %vm727_vm2 = vcmask (!%p513_p2), 64512  }
   0xa   : > { %v4642_v19 = vpack.c.bf16 (!%p513_p2), %v630_v18, %v629_v16  ;;  %v3960_v29 = vld [vmem:[%s5967_s4] ss:$0 sm:$0xff] (!%p513_p2)  ;;  %s5107_s22 = smov (!%p513_p2), 96   ;;  %s5108_s2 = smov (!%p513_p2), 88   ;;  %vm5286_vm3 = vmpackc.low (!%p513_p2), %vm727_vm2, %vm727_vm2  ;;  %vm813_vm4 = vcmask (!%p513_p2), 121856   ;;  %vm817_vm5 = vcmask (!%p513_p2), 120832  }
   0xb   : > { %4639 = vmatprep.subr.bf16.mxu0 (!%p513_p2), %v4638_v17  ;;  %v3961_v36 = vld [vmem:[%s5969_s6] ss:$0 sm:$0xff] (!%p513_p2)  ;;  %s6001_s23 = smov (!%p513_p2), 120   ;;  %s6009_s26 = sld [smem:[#allocation3_spill]] (!%p513_p2)  ;;  %vm848_vm6 = vcmask (!%p513_p2), 1046528   ;;  %vm5111_vm7 = vmmov (!%p513_p2), 1  }
   0xc   : > { %4641 = vmatpush3.bf16.msra.mxu0 (!%p513_p2), %v4638_v17  ;;  %vm5314_vm8 = vmpackc.low (!%p513_p2), %vm848_vm6, %vm5111_vm7  ;;  %s5996_s20 = smov (!%p513_p2), 112   ;;  %s6000_s21 = smov (!%p513_p2), 80   ;;  %vm1555_vm9 = vcmask (!%p513_p2), 130048   ;;  %vm1558_vm10 = vcmask (!%p513_p2), 195584   ;;  %vm3231_vm11 = vcmask (!%p513_p2), 261123   ;;  %vm3282_vm12 = vcmask (!%p513_p2), 1044480  }
   0xd   : > { %4643 = vmatprep.subr.bf16.mxu0 (!%p513_p2), %v4642_v19  ;;  %s5994_s24 = smov (!%p513_p2), 48   ;;  %s5985_s25 = smov (!%p513_p2), 104   ;;  %vm3893_vm13 = vcmask (!%p513_p2), 84992   ;;  %vm3891_vm14 = vcmask (!%p513_p2), 89088  }
   0xe   : > { %s5990_s30 = smov (!%p513_p2), 72   ;;  %s5989_s0 = smov (!%p513_p2), 40  }
  0x10   : > { %s6027_s28 = smov (!%p566_p3, %s3950_s28), 1  ;;  %4645 = vmatpush3.bf16.msra.mxu0 %v4642_v19 }
  0x11   : > { %s5984_s29 = sshll.u32 %s6027_s28, 4  ;;  %v5299_v49 = vld [vmem:[%s6009_s26] sm:$0xff]  ;;  %v5304_v51 = vld [vmem:[%s6009_s26 + $0x8] sm:$0x7f] }
  0x12   : > { %s570_s1 = scalar_lea.vmem %s6006_s19, %s5984_s29  ;;  %s5995_s19 = smov 64  }
  0x13   : > { %v5233_v0 = vld [vmem:[%s570_s1] sm:$0xff]  ;;  %v5235_v1 = vld [vmem:[%s570_s1 + $0x8] sm:$0x7f]  ;;  %s5991_s1 = smov 56   ;;  %s5992_s29 = smov 8  }
  0x14   : > { %v583_v2 = vsel %vm582_vm0, %v5233_v0, 0.0  ;;  %v587_v3 = vsel %vm586_vm1, %v5235_v1, 0.0 }
  0x15   : > { %584 = vadd.xlane.f32.xlu0 %v583_v2 }
  0x19   : > { %588 = vadd.xlane.f32.xlu0 %v587_v3 }
  0xa2   : > { %v585_v4 = vpop.xlane.xlu0 %584 }
  0xa3   : > { %v591_v5 = vmul.f32 0.03125, %v585_v4 }
  0xa5   : > { %v593_v6 = vsub.f32 %v5233_v0, %v591_v5 }
  0xa6   : > { %v589_v7 = vpop.xlane.xlu0 %588 }
  0xa7   : > { %v592_v8 = vmul.f32 0.03125, %v589_v7  ;;  %v595_v9 = vmul.f32 %v593_v6, %v593_v6 }
  0xa9   : > { %v594_v10 = vsub.f32 %v5235_v1, %v592_v8  ;;  %v597_v11 = vsel %vm582_vm0, %v595_v9, 0.0 }
  0xaa   : > { %598 = vadd.xlane.f32.xlu1 %v597_v11 }
  0xab   : > { %v596_v12 = vmul.f32 %v594_v10, %v594_v10 }
  0xad   : > { %v600_v13 = vsel %vm586_vm1, %v596_v12, 0.0 }
  0xae   : > { %601 = vadd.xlane.f32.xlu1 %v600_v13 }
 0x137   : > { %v599_v20 = vpop.xlane.xlu1 %598 }
 0x138   : > { %v603_v21 = vmul.f32 0.03125, %v599_v20 }
 0x13a   : > { %v605_v22 = vadd.f32 1e-05, %v603_v21 }
 0x13b   : > { %v602_v23 = vpop.xlane.xlu1 %601 }
 0x13c   : > { %5005 = vrsqrt.f32 %v605_v22  ;;  %v604_v24 = vmul.f32 0.03125, %v602_v23 }
 0x13e   : > { %v606_v25 = vadd.f32 1e-05, %v604_v24 }
 0x140   : > { %5007 = vrsqrt.f32 %v606_v25 }
 0x146   : > { %v5006_v26 = vpop.eup %5005 }
 0x147   : > { %v609_v28 = vmul.f32 %v5006_v26, %v593_v6 }
 0x149   : > { %v617_v30 = vmul.f32 %v3959_v27, %v609_v28 }
 0x14a   : > { %v5008_v31 = vpop.eup %5007 }
 0x14b   : > { %v610_v32 = vmul.f32 %v5008_v31, %v594_v10  ;;  %v625_v33 = vadd.f32 %v3960_v29, %v617_v30 }
 0x14d   : > { %v618_v34 = vmul.f32 %v3959_v27, %v610_v32  ;;  %4321 = vmatprep.mubr.msk.f32.mxu0 %vm582_vm0, %v625_v33 }
 0x14f   : > { %v626_v35 = vadd.f32 %v3960_v29, %v618_v34 }
 0x151   : > { %4322 = vmatmul.mubr.msk.f32.vlgmr.msra.gmra.mrb[0].mxu0 %vm582_vm0, %v626_v35 }
 0x224   : > { %v4323_v37 = vpop.f32.mrb[0].mxu0 }
 0x225   : > { %v716_v38 = vadd.f32 %v4323_v37, %v3961_v36  ;;  %v710_v39 = vpop.f32.mrb[1].mxu0 }
 0x226   : > { %v711_v40 = vadd.f32 %v3961_v36, %v710_v39 }
 0x227   : > { %v5280_v43 = vmul.f32 0.35355338, %v716_v38 }
 0x228   : > { %v5268_v41 = vpack.i.bf16 %v716_v38, %v711_v40  ;;  %v5270_v42 = vmul.f32 0.35355338, %v711_v40 }
 0x22a   : > { %4926 = vrot.lane.b32.xlu0 %v5268_v41, %s5107_s22  ;;  %4328 = vmatprep.mubr.msk.f32.mxu1 %vm727_vm2, %v5270_v42 }
 0x22e   : > { %4936 = vrot.lane.b32.xlu0 %v5268_v41, %s5108_s2 }
 0x232   : > { %926 = vrot.lane.b32.xlu0 %v5270_v42, %s6001_s23 }
 0x236   : > { %928 = vrot.lane.b32.xlu0 %v5280_v43, %s6001_s23  ;;  %s6018_s23 = smov 72  }
 0x29c   : > { %v4927_v44 = vpop.permute.xlu0 %4926 }
 0x29d   : > { %v4929_v45 = vunpack.i.h.bf16 %v4927_v44  ;;  %v4928_v46 = vunpack.i.l.bf16 %v4927_v44 }
 0x29f   : > { %v4646_v48 = vpack.c.bf16 %v4929_v45, %v4928_v46 }
 0x2a0   : > { %v4937_v7 = vpop.permute.xlu0 %4936 }
 0x2a1   : > { %4648 = vmatprep.subr.msk.bf16.mxu1 %vm5286_vm3, %v4646_v48  ;;  %v4939_v9 = vunpack.i.h.bf16 %v4937_v7  ;;  %v4938_v10 = vunpack.i.l.bf16 %v4937_v7 }
 0x2a2   : > { %4651 = vmatpush3.bf16.xpose.msk.msra.mxu1 %vm5286_vm3, %v4646_v48 }
 0x2a3   : > { %v4658_v15 = vpack.c.bf16 %v4939_v9, %v4938_v10 }
 0x2a4   : > { %v927_v20 = vpop.permute.xlu0 %926 }
 0x2a8   : > { %v929_v21 = vpop.permute.xlu0 %928 }
 0x2a9   : > { %4329 = vmatmul.mubr.msk.f32.vlgmr.msra.gmra.mrb[0].mxu1 %vm727_vm2, %v5280_v43 }
 0x37c   : > { %v4330_v50 = vpop.f32.mrb[0].mxu1 }
 0x37d   : > { %v804_v52 = vpop.f32.mrb[1].mxu1  ;;  %v810_v54 = vadd.f32 %v4330_v50, %v5304_v51 }
 0x37e   : > { %v805_v53 = vadd.f32 %v804_v52, %v5299_v49 }
 0x37f   : > { %v818_v56 = vsel %vm817_vm5, %v810_v54, -inf }
 0x380   : > { %v814_v55 = vsel %vm813_vm4, %v805_v53, -inf }
 0x381   : > { %815 = vmax.xlane.f32.xlu1 %v814_v55 }
 0x385   : > { %819 = vmax.xlane.f32.xlu1 %v818_v56 }
 0x40e   : > { %v816_v57 = vpop.xlane.xlu1 %815 }
 0x40f   : > { %v821_v58 = vsub.f32 %v805_v53, %v816_v57 }
 0x411   : > { %v823_v61 = vmul.f32 1.442695, %v821_v58 }
 0x412   : > { %v820_v59 = vpop.xlane.xlu1 %819 }
 0x413   : > { %v822_v60 = vsub.f32 %v810_v54, %v820_v59 }
 0x415   : > { %v825_v62 = vmul.f32 1.442695, %v822_v60 }
 0x417   : > { %5009 = vpow2.f32 %v825_v62 }
 0x418   : > { %5011 = vpow2.f32 %v823_v61 }
 0x421   : > { %v5010_v63 = vpop.eup %5009 }
 0x422   : > { %v830_v2 = vsel %vm817_vm5, %v5010_v63, 0.0  ;;  %v5012_v3 = vpop.eup %5011 }
 0x423   : > { %831 = vadd.xlane.f32.xlu1 %v830_v2  ;;  %v827_v4 = vsel %vm813_vm4, %v5012_v3, 0.0 }
 0x427   : > { %828 = vadd.xlane.f32.xlu1 %v827_v4 }
 0x438   : > { %4931 = vrot.lane.b32.xlu1 %v5268_v41, %s5995_s19 }
 0x4b0   : > { %v832_v5 = vpop.xlane.xlu1 %831 }
 0x4b1   : > { %5013 = vrcp.f32 %v832_v5 }
 0x4b4   : > { %v829_v6 = vpop.xlane.xlu1 %828 }
 0x4b5   : > { %5015 = vrcp.f32 %v829_v6 }
 0x4b8   : > { %v4932_v8 = vpop.permute.xlu1 %4931 }
 0x4b9   : > { %v4934_v11 = vunpack.i.h.bf16 %v4932_v8  ;;  %v4933_v12 = vunpack.i.l.bf16 %v4932_v8 }
 0x4bb   : > { %v4652_v14 = vpack.c.bf16 %v4934_v11, %v4933_v12  ;;  %v5014_v16 = vpop.eup %5013 }
 0x4bc   : > { %v836_v19 = vmul.f32 %v5014_v16, %v5010_v63 }
 0x4bd   : > { %4654 = vmatprep.subr.msk.bf16.mxu1 %vm5314_vm8, %v4652_v14 }
 0x4be   : > { %4657 = vmatpush3.bf16.msk.msra.mxu1 %vm5314_vm8, %v4652_v14 }
 0x4bf   : > { %v5016_v17 = vpop.eup %5015  ;;  %4660 = vmatprep.subr.msk.bf16.mxu1 %vm5286_vm3, %v4658_v15 }
 0x4c0   : > { %v835_v18 = vmul.f32 %v5016_v17, %v5012_v3 }
 0x4c2   : > { %4335 = vmatprep.mubr.msk.f32.mxu1 %vm813_vm4, %v835_v18 }
 0x4c3   : > { %4336 = vmatmul.mubr.msk.f32.vlgmr.msra.gmra.mrb[2].mxu1 %vm813_vm4, %v836_v19 }
 0x4c4   : > { %4342 = vmatprep.mubr.msk.f32.mxu1 %vm727_vm2, %v927_v20 }
 0x4c7   : > { %4663 = vmatpush3.bf16.xpose.msk.msra.mxu1 %vm5286_vm3, %v4658_v15 }
 0x4ce   : > { %4343 = vmatmul.mubr.msk.f32.vlgmr.msra.gmra.mrb[4].mxu1 %vm727_vm2, %v929_v21 }
 0x596   : > { %v5330_v22 = vpop.f32.mrb[2].mxu1 }
 0x597   : > { %v5332_v23 = vpop.f32.mrb[3].mxu1 }
 0x5a1   : > { %v4344_v24 = vpop.f32.mrb[4].mxu1 }
 0x5a2   : > { %v1014_v25 = vadd.f32 %v4344_v24, %v5304_v51  ;;  %v1008_v26 = vpop.f32.mrb[5].mxu1 }
 0x5a3   : > { %v1009_v27 = vadd.f32 %v1008_v26, %v5299_v49 }
 0x5a4   : > { %v1020_v28 = vsel %vm817_vm5, %v1014_v25, -inf }
 0x5a5   : > { %1021 = vmax.xlane.f32.xlu0 %v1020_v28  ;;  %v1017_v29 = vsel %vm813_vm4, %v1009_v27, -inf }
 0x5a6   : > { %1018 = vmax.xlane.f32.xlu1 %v1017_v29 }
 0x5b7   : > { %4941 = vrot.lane.b32.xlu1 %v5268_v41, %s5991_s1  ;;  %s6016_s1 = smov 48  }
 0x5bb   : > { %1127 = vrot.lane.b32.xlu1 %v5270_v42, %s5996_s20 }
 0x5bf   : > { %1129 = vrot.lane.b32.xlu1 %v5280_v43, %s5996_s20  ;;  %s6017_s20 = smov 56  }
 0x632   : > { %v1022_v30 = vpop.xlane.xlu0 %1021 }
 0x633   : > { %v1024_v31 = vsub.f32 %v1014_v25, %v1022_v30  ;;  %v1019_v32 = vpop.xlane.xlu1 %1018 }
 0x634   : > { %v1023_v33 = vsub.f32 %v1009_v27, %v1019_v32 }
 0x635   : > { %v1027_v34 = vmul.f32 1.442695, %v1024_v31 }
 0x636   : > { %v1025_v35 = vmul.f32 1.442695, %v1023_v33 }
 0x637   : > { %5017 = vpow2.f32 %v1027_v34  ;;  %v4942_v36 = vpop.permute.xlu1 %4941 }
 0x638   : > { %v4944_v37 = vunpack.i.h.bf16 %v4942_v36  ;;  %v4943_v38 = vunpack.i.l.bf16 %v4942_v36  ;;  %5019 = vpow2.f32 %v1025_v35 }
 0x63a   : > { %v4664_v39 = vpack.c.bf16 %v4944_v37, %v4943_v38 }
 0x63b   : > { %v1128_v60 = vpop.permute.xlu1 %1127 }
 0x63c   : > { %4666 = vmatprep.subr.msk.bf16.mxu0 %vm5314_vm8, %v4664_v39 }
 0x63d   : > { %4669 = vmatpush3.bf16.msk.msra.mxu0 %vm5314_vm8, %v4664_v39 }
 0x63f   : > { %v1130_v61 = vpop.permute.xlu1 %1129 }
 0x641   : > { %v5018_v40 = vpop.eup %5017 }
 0x642   : > { %v1032_v44 = vsel %vm817_vm5, %v5018_v40, 0.0  ;;  %v5020_v45 = vpop.eup %5019 }
 0x643   : > { %1033 = vadd.xlane.f32.xlu0 %v1032_v44  ;;  %v1029_v46 = vsel %vm813_vm4, %v5020_v45, 0.0 }
 0x647   : > { %1030 = vadd.xlane.f32.xlu0 %v1029_v46 }
 0x65d   : > { %4946 = vrot.lane.b32.xlu0 %v5268_v41, %s6000_s21  ;;  %s6019_s21 = smov 104  }
 0x6d0   : > { %v1034_v48 = vpop.xlane.xlu0 %1033 }
 0x6d1   : > { %5021 = vrcp.f32 %v1034_v48 }
 0x6d4   : > { %v1031_v50 = vpop.xlane.xlu0 %1030 }
 0x6d5   : > { %5023 = vrcp.f32 %v1031_v50 }
 0x6d8   : > { %v4947_v52 = vpop.permute.xlu0 %4946 }
 0x6d9   : > { %v4949_v53 = vunpack.i.h.bf16 %v4947_v52  ;;  %v4948_v54 = vunpack.i.l.bf16 %v4947_v52 }
 0x6db   : > { %v4670_v55 = vpack.c.bf16 %v4949_v53, %v4948_v54  ;;  %v5022_v56 = vpop.eup %5021 }
 0x6dc   : > { %v1038_v59 = vmul.f32 %v5022_v56, %v5018_v40 }
 0x6dd   : > { %4672 = vmatprep.subr.msk.bf16.mxu0 %vm5286_vm3, %v4670_v55 }
 0x6df   : > { %v5024_v57 = vpop.eup %5023 }
 0x6e0   : > { %v1037_v58 = vmul.f32 %v5024_v57, %v5020_v45 }
 0x6e2   : > { %4349 = vmatprep.mubr.msk.f32.mxu0 %vm813_vm4, %v1037_v58 }
 0x6e3   : > { %4350 = vmatmul.mubr.msk.f32.vlgmr.msra.gmra.mrb[2].mxu0 %vm813_vm4, %v1038_v59 }
 0x6e4   : > { %4675 = vmatpush3.bf16.xpose.msk.msra.mxu0 %vm5286_vm3, %v4670_v55  ;;  %4356 = vmatprep.mubr.msk.f32.mxu0 %vm727_vm2, %v1128_v60 }
 0x6eb   : > { %4357 = vmatmul.mubr.msk.f32.vlgmr.msra.gmra.mrb[4].mxu0 %vm727_vm2, %v1130_v61 }
 0x7b6   : > { %v5360_v62 = vpop.f32.mrb[2].mxu0 }
 0x7b7   : > { %v5362_v63 = vpop.f32.mrb[3].mxu0 }
 0x7be   : > { %v4358_v2 = vpop.f32.mrb[4].mxu0 }
 0x7bf   : > { %v1215_v3 = vadd.f32 %v4358_v2, %v5304_v51  ;;  %v1209_v4 = vpop.f32.mrb[5].mxu0 }
 0x7c0   : > { %v1210_v5 = vadd.f32 %v1209_v4, %v5299_v49 }
 0x7c1   : > { %v1221_v6 = vsel %vm817_vm5, %v1215_v3, -inf }
 0x7c2   : > { %1222 = vmax.xlane.f32.xlu0 %v1221_v6  ;;  %v1218_v7 = vsel %vm813_vm4, %v1210_v5, -inf }
 0x7c3   : > { %1219 = vmax.xlane.f32.xlu1 %v1218_v7  ;;  %v1561_v7 = vld [vmem:[%s5970_s7] sm:$0xff] }
 0x7d4   : > { %4951 = vrot.lane.b32.xlu1 %v5268_v41, %s5994_s24  ;;  %s6012_s24 = smov 120  }
 0x7d8   : > { %1328 = vrot.lane.b32.xlu1 %v5270_v42, %s5985_s25 }
 0x7dc   : > { %1330 = vrot.lane.b32.xlu1 %v5280_v43, %s5985_s25  ;;  %s5987_s25 = smov 16  }
 0x84f   : > { %v1223_v8 = vpop.xlane.xlu0 %1222 }
 0x850   : > { %v1225_v9 = vsub.f32 %v1215_v3, %v1223_v8  ;;  %v1220_v10 = vpop.xlane.xlu1 %1219  ;;  %v1563_v8 = vld [vmem:[%s5970_s7 + $0x10] sm:$0xff] }
 0x851   : > { %v1224_v11 = vsub.f32 %v1210_v5, %v1220_v10  ;;  %v1564_v10 = vld [vmem:[%s5970_s7 + $0x18] sm:$0xff] }
 0x852   : > { %v1228_v12 = vmul.f32 1.442695, %v1225_v9 }
 0x853   : > { %v1226_v14 = vmul.f32 1.442695, %v1224_v11  ;;  %v4698_v11 = vpack.c.bf16 %v1564_v10, %v1563_v8 }
 0x854   : > { %5025 = vpow2.f32 %v1228_v12  ;;  %v4952_v15 = vpop.permute.xlu1 %4951 }
 0x855   : > { %v4954_v16 = vunpack.i.h.bf16 %v4952_v15  ;;  %v4953_v17 = vunpack.i.l.bf16 %v4952_v15  ;;  %5027 = vpow2.f32 %v1226_v14 }
 0x857   : > { %v4676_v18 = vpack.c.bf16 %v4954_v16, %v4953_v17 }
 0x858   : > { %v1329_v33 = vpop.permute.xlu1 %1328 }
 0x859   : > { %4678 = vmatprep.subr.msk.bf16.mxu1 %vm5314_vm8, %v4676_v18 }
 0x85a   : > { %4681 = vmatpush3.bf16.msk.msra.mxu1 %vm5314_vm8, %v4676_v18 }
 0x85c   : > { %v1331_v34 = vpop.permute.xlu1 %1330 }
 0x85e   : > { %v5026_v42 = vpop.eup %5025 }
 0x85f   : > { %v1233_v43 = vsel %vm817_vm5, %v5026_v42, 0.0  ;;  %v5028_v19 = vpop.eup %5027 }
 0x860   : > { %1234 = vadd.xlane.f32.xlu0 %v1233_v43  ;;  %v1230_v20 = vsel %vm813_vm4, %v5028_v19, 0.0 }
 0x864   : > { %1231 = vadd.xlane.f32.xlu0 %v1230_v20 }
 0x87a   : > { %4956 = vrot.lane.b32.xlu0 %v5268_v41, %s5990_s30  ;;  %s6013_s30 = smov 80  }
 0x8ed   : > { %v1235_v21 = vpop.xlane.xlu0 %1234 }
 0x8ee   : > { %5029 = vrcp.f32 %v1235_v21 }
 0x8f1   : > { %v1232_v24 = vpop.xlane.xlu0 %1231 }
 0x8f2   : > { %5031 = vrcp.f32 %v1232_v24 }
 0x8f5   : > { %v4957_v25 = vpop.permute.xlu0 %4956 }
 0x8f6   : > { %v4959_v26 = vunpack.i.h.bf16 %v4957_v25  ;;  %v4958_v27 = vunpack.i.l.bf16 %v4957_v25 }
 0x8f8   : > { %v4682_v28 = vpack.c.bf16 %v4959_v26, %v4958_v27  ;;  %v5030_v29 = vpop.eup %5029 }
 0x8f9   : > { %v1239_v32 = vmul.f32 %v5030_v29, %v5026_v42 }
 0x8fa   : > { %4684 = vmatprep.subr.msk.bf16.mxu1 %vm5286_vm3, %v4682_v28 }
 0x8fc   : > { %v5032_v30 = vpop.eup %5031 }
 0x8fd   : > { %v1238_v31 = vmul.f32 %v5032_v30, %v5028_v19 }
 0x8ff   : > { %4363 = vmatprep.mubr.msk.f32.mxu1 %vm813_vm4, %v1238_v31 }
 0x900   : > { %4364 = vmatmul.mubr.msk.f32.vlgmr.msra.gmra.mrb[6].mxu1 %vm813_vm4, %v1239_v32 }
 0x901   : > { %4687 = vmatpush3.bf16.xpose.msk.msra.mxu1 %vm5286_vm3, %v4682_v28  ;;  %4370 = vmatprep.mubr.msk.f32.mxu1 %vm727_vm2, %v1329_v33 }
 0x908   : > { %4371 = vmatmul.mubr.msk.f32.vlgmr.msra.gmra.mrb[8].mxu1 %vm727_vm2, %v1331_v34 }
 0x9d3   : > { %v4365_v35 = vpop.f32.mrb[6].mxu1 }
 0x9d4   : > { %v1319_v36 = vpop.f32.mrb[7].mxu1 }
 0x9db   : > { %v4372_v37 = vpop.f32.mrb[8].mxu1 }
 0x9dc   : > { %v1416_v38 = vadd.f32 %v4372_v37, %v5304_v51  ;;  %v1410_v39 = vpop.f32.mrb[9].mxu1 }
 0x9dd   : > { %v1411_v40 = vadd.f32 %v1410_v39, %v5299_v49 }
 0x9de   : > { %v1422_v44 = vsel %vm817_vm5, %v1416_v38, -inf }
 0x9df   : > { %1423 = vmax.xlane.f32.xlu0 %v1422_v44  ;;  %v1419_v45 = vsel %vm813_vm4, %v1411_v40, -inf }
 0x9e0   : > { %1420 = vmax.xlane.f32.xlu1 %v1419_v45  ;;  %v1699_v45 = vld [vmem:[%s5974_s11] sm:$0xff] }
 0x9f1   : > { %4961 = vrot.lane.b32.xlu1 %v5268_v41, %s5989_s0  ;;  %s6014_s0 = smov 112  }
 0x9f5   : > { %1533 = vrot.lane.b32.xlu1 %v5360_v62, %s5992_s29 }
 0x9f9   : > { %1539 = vrot.lane.b32.xlu1 %v1319_v36, %s5987_s25 }
 0x9fd   : > { %1541 = vrot.lane.b32.xlu1 %v4365_v35, %s5987_s25  ;;  %s5998_s25 = smov 24  }
 0xa6c   : > { %v1424_v46 = vpop.xlane.xlu0 %1423 }
 0xa6d   : > { %v1426_v48 = vsub.f32 %v1416_v38, %v1424_v46  ;;  %v1421_v50 = vpop.xlane.xlu1 %1420  ;;  %v1700_v46 = vld [vmem:[%s5974_s11 + $0x8] sm:$0xff] }
 0xa6e   : > { %v1425_v52 = vsub.f32 %v1411_v40, %v1421_v50  ;;  %v1701_v50 = vld [vmem:[%s5974_s11 + $0x10] sm:$0xff] }
 0xa6f   : > { %v1429_v53 = vmul.f32 1.442695, %v1426_v48  ;;  %v4702_v48 = vpack.c.bf16 %v1700_v46, %v1699_v45 }
 0xa70   : > { %v1427_v54 = vmul.f32 1.442695, %v1425_v52  ;;  %v1702_v52 = vld [vmem:[%s5974_s11 + $0x18] sm:$0xff] }
 0xa71   : > { %v4962_v55 = vpop.permute.xlu1 %4961  ;;  %4703 = vmatprep.subr.bf16.mxu1 %v4702_v48 }
 0xa72   : > { %5033 = vpow2.f32 %v1427_v54  ;;  %v4964_v56 = vunpack.i.h.bf16 %v4962_v55  ;;  %v4963_v57 = vunpack.i.l.bf16 %v4962_v55  ;;  %4705 = vmatpush3.bf16.msra.mxu1 %v4702_v48  ;;  %v1801_v54 = vld [vmem:[%s5976_s13] sm:$0xff]  ;;  %v1802_v55 = vld [vmem:[%s5976_s13 + $0x8] sm:$0xff] }
 0xa73   : > { %5035 = vpow2.f32 %v1429_v53  ;;  %v4706_v53 = vpack.c.bf16 %v1702_v52, %v1701_v50  ;;  %v4000_v52 = vld [vmem:[%s5977_s14] ss:$0 sm:$0xff] }
 0xa74   : > { %v4688_v41 = vpack.c.bf16 %v4964_v56, %v4963_v57  ;;  %v1803_v56 = vld [vmem:[%s5976_s13 + $0x10] sm:$0xff]  ;;  %v4710_v57 = vpack.c.bf16 %v1802_v55, %v1801_v54 }
 0xa75   : > { %v1534_v15 = vpop.permute.xlu1 %1533  ;;  %4707 = vmatprep.subr.bf16.mxu1 %v4706_v53 }
 0xa76   : > { %4690 = vmatprep.subr.msk.bf16.mxu0 %vm5314_vm8, %v4688_v41  ;;  %v1554_v19 = vsel %vm727_vm2, %v5330_v22, %v1534_v15  ;;  %4709 = vmatpush3.bf16.msra.mxu1 %v4706_v53 }
 0xa77   : > { %4693 = vmatpush3.bf16.msk.msra.mxu0 %vm5314_vm8, %v4688_v41  ;;  %v1804_v41 = vld [vmem:[%s5976_s13 + $0x18] sm:$0xff] }
 0xa79   : > { %v1540_v16 = vpop.permute.xlu1 %1539 }
 0xa7c   : > { %v5034_v58 = vpop.eup %5033 }
 0xa7d   : > { %v1431_v59 = vsel %vm813_vm4, %v5034_v58, 0.0  ;;  %v5036_v60 = vpop.eup %5035  ;;  %v1542_v18 = vpop.permute.xlu1 %1541 }
 0xa7e   : > { %1432 = vadd.xlane.f32.xlu0 %v1431_v59  ;;  %v1434_v61 = vsel %vm817_vm5, %v5036_v60, 0.0  ;;  %v1557_v24 = vsel %vm1555_vm9, %v1554_v19, %v1542_v18  ;;  %v1805_v59 = vld [vmem:[%s5976_s13 + $0x20] sm:$0xff]  ;;  %v1808_v18 = vld [vmem:[%s5976_s13 + $0x38] sm:$0xff]  ;;  %v1810_v19 = vld [vmem:[%s5976_s13 + $0x48] sm:$0xff] }
 0xa82   : > { %1435 = vadd.xlane.f32.xlu0 %v1434_v61 }
 0xa98   : > { %1531 = vrot.lane.b32.xlu0 %v5362_v63, %s5992_s29  ;;  %v1562_v63 = vld [vmem:[%s5970_s7 + $0x8] sm:$0xff] }
 0xa99   : > { %v4694_v9 = vpack.c.bf16 %v1562_v63, %v1561_v7  ;;  %v3995_v63 = vld [vmem:[%s5972_s9] ss:$0 sm:$0xff] }
 0xa9b   : > { %4695 = vmatprep.subr.bf16.mxu0 %v4694_v9 }
 0xb0b   : > { %v1433_v62 = vpop.xlane.xlu0 %1432 }
 0xb0c   : > { %5037 = vrcp.f32 %v1433_v62 }
 0xb0f   : > { %v1436_v2 = vpop.xlane.xlu0 %1435 }
 0xb10   : > { %5039 = vrcp.f32 %v1436_v2 }
 0xb13   : > { %v1532_v17 = vpop.permute.xlu0 %1531 }
 0xb14   : > { %v1553_v42 = vsel %vm727_vm2, %v5332_v23, %v1532_v17  ;;  %v3992_v23 = vld [vmem:[%s5971_s8] ss:$0 sm:$0xff]  ;;  %v1807_v17 = vld [vmem:[%s5976_s13 + $0x30] sm:$0xff] }
 0xb15   : > { %v1556_v20 = vsel %vm1555_vm9, %v1553_v42, %v1540_v16  ;;  %v4722_v42 = vpack.c.bf16 %v1808_v18, %v1807_v17 }
 0xb16   : > { %v5038_v3 = vpop.eup %5037 }
 0xb17   : > { %v1439_v4 = vmul.f32 %v5038_v3, %v5034_v58  ;;  %v4714_v58 = vpack.c.bf16 %v1804_v41, %v1803_v56 }
 0xb19   : > { %4377 = vmatprep.mubr.msk.f32.mxu0 %vm813_vm4, %v1439_v4 }
 0xb1a   : > { %v5040_v5 = vpop.eup %5039 }
 0xb1b   : > { %v1440_v6 = vmul.f32 %v5040_v5, %v5036_v60  ;;  %v1806_v60 = vld [vmem:[%s5976_s13 + $0x28] sm:$0xff] }
 0xb1c   : > { %v4718_v61 = vpack.c.bf16 %v1806_v60, %v1805_v59 }
 0xb1d   : > { %4378 = vmatmul.mubr.msk.f32.vlgmr.msra.gmra.mrb[6].mxu0 %vm813_vm4, %v1440_v6 }
 0xb1e   : > { %4697 = vmatpush3.bf16.msra.mxu0 %v4694_v9  ;;  %v3996_v9 = vld [vmem:[%s5973_s10] ss:$0 sm:$0xff] }
 0xb1f   : > { %4699 = vmatprep.subr.bf16.mxu0 %v4698_v11 }
 0xb22   : > { %4701 = vmatpush3.bf16.msra.mxu0 %v4698_v11 }
 0xb23   : > { %4711 = vmatprep.subr.bf16.mxu0 %v4710_v57 }
 0xbf0   : > { %v4379_v12 = vpop.f32.mrb[6].mxu0 }
 0xbf1   : > { %1549 = vrot.lane.b32.xlu1 %v4379_v12, %s5998_s25  ;;  %v1520_v14 = vpop.f32.mrb[7].mxu0 }
 0xbf2   : > { %1547 = vrot.lane.b32.xlu0 %v1520_v14, %s5998_s25 }
 0xc63   : > { %v1550_v43 = vpop.permute.xlu1 %1549 }
 0xc64   : > { %v1548_v21 = vpop.permute.xlu0 %1547  ;;  %v1560_v26 = vsel %vm1558_vm10, %v1557_v24, %v1550_v43  ;;  %v1809_v43 = vld [vmem:[%s5976_s13 + $0x40] sm:$0xff]  ;;  %v1812_v24 = vld [vmem:[%s5976_s13 + $0x58] sm:$0xff] }
 0xc65   : > { %v1559_v25 = vsel %vm1558_vm10, %v1556_v20, %v1548_v21  ;;  %v4726_v20 = vpack.c.bf16 %v1810_v19, %v1809_v43  ;;  %v1811_v21 = vld [vmem:[%s5976_s13 + $0x50] sm:$0xff] }
 0xc66   : > { %4388 = vmatprep.mubr.msk.f32.mxu0 %vm582_vm0, %v1559_v25  ;;  %v4730_v25 = vpack.c.bf16 %v1812_v24, %v1811_v21  ;;  %v4004_v21 = vld [vmem:[%s5967_s4 + $0x1] ss:$0 sm:$0xff] }
 0xc67   : > { %4389 = vmatmul.mubr.msk.f32.vlgmr.msra.gmra.mrb[8].mxu0 %vm582_vm0, %v1560_v26  ;;  %v1813_v26 = vld [vmem:[%s5976_s13 + $0x60] sm:$0xff] }
 0xc68   : > { %4713 = vmatpush3.bf16.msra.mxu0 %v4710_v57 }
 0xc69   : > { %4715 = vmatprep.subr.bf16.mxu0 %v4714_v58 }
 0xc6c   : > { %4717 = vmatpush3.bf16.msra.mxu0 %v4714_v58 }
 0xc6d   : > { %4719 = vmatprep.subr.bf16.mxu0 %v4718_v61 }
 0xc70   : > { %4721 = vmatpush3.bf16.msra.mxu0 %v4718_v61 }
 0xc71   : > { %4723 = vmatprep.subr.bf16.mxu0 %v4722_v42 }
 0xc74   : > { %4725 = vmatpush3.bf16.msra.mxu0 %v4722_v42  ;;  %v4003_v42 = vld [vmem:[%s5966_s3 + $0x1] ss:$0 sm:$0xff] }
 0xc75   : > { %4727 = vmatprep.subr.bf16.mxu0 %v4726_v20 }
 0xc78   : > { %4729 = vmatpush3.bf16.msra.mxu0 %v4726_v20 }
 0xc79   : > { %4731 = vmatprep.subr.bf16.mxu0 %v4730_v25 }
 0xc7c   : > { %4733 = vmatpush3.bf16.msra.mxu0 %v4730_v25 }
 0xd3a   : > { %v4390_v27 = vpop.f32.mrb[8].mxu0 }
 0xd3b   : > { %v1650_v28 = vadd.f32 %v4390_v27, %v3992_v23  ;;  %v1644_v22 = vpop.f32.mrb[9].mxu0 }
 0xd3c   : > { %v1645_v29 = vadd.f32 %v3992_v23, %v1644_v22  ;;  %v1814_v23 = vld [vmem:[%s5976_s13 + $0x68] sm:$0xff]  ;;  %v1816_v22 = vld [vmem:[%s5976_s13 + $0x78] sm:$0xff] }
 0xd3d   : > { %v5438_v30 = vadd.f32 %v1650_v28, %v5235_v1  ;;  %v4734_v27 = vpack.c.bf16 %v1814_v23, %v1813_v26  ;;  %v1815_v28 = vld [vmem:[%s5976_s13 + $0x70] sm:$0xff] }
 0xd3e   : > { %v5441_v31 = vadd.f32 %v1645_v29, %v5233_v0  ;;  %v4738_v29 = vpack.c.bf16 %v1816_v22, %v1815_v28 }
 0xd3f   : > { %v1660_v32 = vsel %vm586_vm1, %v5438_v30, 0.0  ;;  %4735 = vmatprep.subr.bf16.mxu0 %v4734_v27 }
 0xd40   : > { %1661 = vadd.xlane.f32.xlu1 %v1660_v32  ;;  %v1657_v33 = vsel %vm582_vm0, %v5441_v31, 0.0  ;;  %4737 = vmatpush3.bf16.msra.mxu0 %v4734_v27  ;;  %v3997_v32 = vld [vmem:[%s5975_s12] ss:$0 sm:$0xff]  ;;  %v4010_v27 = vld [vmem:[%s5969_s6 + $0x1] ss:$0 sm:$0xff] }
 0xd41   : > { %1658 = vadd.xlane.f32.xlu0 %v1657_v33  ;;  %4739 = vmatprep.subr.bf16.mxu0 %v4738_v29 }
 0xd44   : > { %4741 = vmatpush3.bf16.msra.mxu0 %v4738_v29 }
 0xdcd   : > { %v1662_v34 = vpop.xlane.xlu1 %1661 }
 0xdce   : > { %v1664_v35 = vmul.f32 0.03125, %v1662_v34  ;;  %v1659_v36 = vpop.xlane.xlu0 %1658 }
 0xdcf   : > { %v1663_v37 = vmul.f32 0.03125, %v1659_v36 }
 0xdd0   : > { %v1666_v38 = vsub.f32 %v5438_v30, %v1664_v35 }
 0xdd1   : > { %v1665_v1 = vsub.f32 %v5441_v31, %v1663_v37 }
 0xdd2   : > { %v1668_v40 = vmul.f32 %v1666_v38, %v1666_v38 }
 0xdd3   : > { %v1667_v39 = vmul.f32 %v1665_v1, %v1665_v1 }
 0xdd4   : > { %v1672_v44 = vsel %vm586_vm1, %v1668_v40, 0.0 }
 0xdd5   : > { %v1669_v0 = vsel %vm582_vm0, %v1667_v39, 0.0 }
 0xdd6   : > { %1670 = vadd.xlane.f32.xlu0 %v1669_v0 }
 0xdda   : > { %1673 = vadd.xlane.f32.xlu0 %v1672_v44 }
 0xe63   : > { %v1671_v62 = vpop.xlane.xlu0 %1670 }
 0xe64   : > { %v1675_v2 = vmul.f32 0.03125, %v1671_v62 }
 0xe66   : > { %v1677_v3 = vadd.f32 1e-05, %v1675_v2 }
 0xe67   : > { %v1674_v4 = vpop.xlane.xlu0 %1673 }
 0xe68   : > { %5041 = vrsqrt.f32 %v1677_v3  ;;  %v1676_v5 = vmul.f32 0.03125, %v1674_v4 }
 0xe6a   : > { %v1678_v6 = vadd.f32 1e-05, %v1676_v5 }
 0xe6c   : > { %5043 = vrsqrt.f32 %v1678_v6  ;;  %v4005_v6 = vld [vmem:[%s5968_s5 + $0x20] sm:$0xff] }
 0xe72   : > { %v5042_v7 = vpop.eup %5041 }
 0xe73   : > { %v1681_v8 = vmul.f32 %v5042_v7, %v1665_v1  ;;  %v4006_v7 = vld [vmem:[%s5968_s5 + $0x28] sm:$0xff] }
 0xe75   : > { %v1689_v10 = vmul.f32 %v3995_v63, %v1681_v8  ;;  %v4007_v8 = vld [vmem:[%s5968_s5 + $0x30] sm:$0xff] }
 0xe76   : > { %v5044_v11 = vpop.eup %5043 }
 0xe77   : > { %v1682_v12 = vmul.f32 %v5044_v11, %v1666_v38  ;;  %v1697_v14 = vadd.f32 %v3996_v9, %v1689_v10 }
 0xe79   : > { %v1690_v15 = vmul.f32 %v3995_v63, %v1682_v12  ;;  %4399 = vmatprep.mubr.msk.f32.mxu1 %vm582_vm0, %v1697_v14  ;;  %v4742_v63 = vpack.c.bf16 %v4006_v7, %v4005_v6 }
 0xe7b   : > { %v1698_v16 = vadd.f32 %v3996_v9, %v1690_v15  ;;  %4743 = vmatprep.subr.bf16.mxu1 %v4742_v63  ;;  %v4008_v9 = vld [vmem:[%s5968_s5 + $0x38] sm:$0xff] }
 0xe7c   : > { %v4746_v10 = vpack.c.bf16 %v4008_v9, %v4007_v8 }
 0xe7d   : > { %4400 = vmatmul.mubr.msk.f32.vlgmr.msra.gmra.mrb[10].mxu1 %vm582_vm0, %v1698_v16 }
 0xe7e   : > { %4745 = vmatpush3.bf16.msra.mxu1 %v4742_v63 }
 0xe7f   : > { %4747 = vmatprep.subr.bf16.mxu1 %v4746_v10 }
 0xe82   : > { %4749 = vmatpush3.bf16.msra.mxu1 %v4746_v10 }
 0xf50   : > { %v4401_v33 = vpop.f32.mrb[10].mxu1 }
 0xf51   : > { %v1788_v34 = vadd.f32 %v4401_v33, %v3997_v32  ;;  %v1782_v35 = vpop.f32.mrb[11].mxu1 }
 0xf52   : > { %v1783_v36 = vadd.f32 %v3997_v32, %v1782_v35 }
 0xf53   : > { %v1794_v37 = vmul.f32 0.70710677, %v1788_v34  ;;  %v1792_v45 = vmul.f32 0.5, %v1788_v34 }
 0xf54   : > { %v1793_v38 = vmul.f32 0.70710677, %v1783_v36  ;;  %v1791_v40 = vmul.f32 0.5, %v1783_v36 }
 0xf55   : > { %5045 = verf.f32 %v1794_v37 }
 0xf56   : > { %5047 = verf.f32 %v1793_v38 }
 0xf5f   : > { %v5046_v1 = vpop.eup %5045 }
 0xf60   : > { %v5048_v39 = vpop.eup %5047  ;;  %v1798_v0 = vadd.f32 1.0, %v5046_v1 }
 0xf61   : > { %v1797_v44 = vadd.f32 1.0, %v5048_v39 }
 0xf62   : > { %v1800_v48 = vmul.f32 %v1798_v0, %v1792_v45 }
 0xf63   : > { %v1799_v46 = vmul.f32 %v1797_v44, %v1791_v40 }
 0xf65   : > { %4434 = vmatprep.mubr.f32.mxu0 %v1799_v46 }
 0xf66   : > { %4435 = vmatmul.mubr.f32.vlgmr.msra.gmra.mrb[10].mxu0 %v1800_v48 }
0x1039   : > { %v4436_v50 = vpop.f32.mrb[10].mxu0 }
0x103a   : > { %v1893_v53 = vadd.f32 %v4436_v50, %v5438_v30  ;;  %v1883_v54 = vpop.f32.mrb[11].mxu0 }
0x103b   : > { %v1892_v55 = vadd.f32 %v1883_v54, %v5441_v31 }
0x103c   : > { %v5527_v56 = vadd.f32 %v4000_v52, %v1893_v53 }
0x103d   : > { %v5529_v57 = vadd.f32 %v4000_v52, %v1892_v55 }
0x103e   : > { %v1910_v41 = vsel %vm586_vm1, %v5527_v56, 0.0 }
0x103f   : > { %1911 = vadd.xlane.f32.xlu1 %v1910_v41  ;;  %v1907_v58 = vsel %vm582_vm0, %v5529_v57, 0.0 }
0x1040   : > { %1908 = vadd.xlane.f32.xlu0 %v1907_v58 }
0x10cc   : > { %v1912_v59 = vpop.xlane.xlu1 %1911 }
0x10cd   : > { %v1914_v60 = vmul.f32 0.03125, %v1912_v59  ;;  %v1909_v61 = vpop.xlane.xlu0 %1908 }
0x10ce   : > { %v1913_v62 = vmul.f32 0.03125, %v1909_v61 }
0x10cf   : > { %v1916_v30 = vsub.f32 %v5527_v56, %v1914_v60 }
0x10d0   : > { %v1915_v31 = vsub.f32 %v5529_v57, %v1913_v62 }
0x10d1   : > { %v1918_v2 = vmul.f32 %v1916_v30, %v1916_v30 }
0x10d2   : > { %v1917_v3 = vmul.f32 %v1915_v31, %v1915_v31 }
0x10d3   : > { %v1922_v4 = vsel %vm586_vm1, %v1918_v2, 0.0 }
0x10d4   : > { %1923 = vadd.xlane.f32.xlu1 %v1922_v4  ;;  %v1919_v5 = vsel %vm582_vm0, %v1917_v3, 0.0 }
0x10d5   : > { %1920 = vadd.xlane.f32.xlu0 %v1919_v5 }
0x1161   : > { %v1924_v11 = vpop.xlane.xlu1 %1923 }
0x1162   : > { %v1926_v12 = vmul.f32 0.03125, %v1924_v11  ;;  %v1921_v14 = vpop.xlane.xlu0 %1920 }
0x1163   : > { %v1925_v15 = vmul.f32 0.03125, %v1921_v14 }
0x1164   : > { %v1928_v16 = vadd.f32 1e-05, %v1926_v12 }
0x1165   : > { %v1927_v17 = vadd.f32 1e-05, %v1925_v15 }
0x1166   : > { %5049 = vrsqrt.f32 %v1928_v16 }
0x1167   : > { %5051 = vrsqrt.f32 %v1927_v17 }
0x1170   : > { %v5050_v18 = vpop.eup %5049 }
0x1171   : > { %v5052_v43 = vpop.eup %5051  ;;  %v1932_v19 = vmul.f32 %v5050_v18, %v1916_v30 }
0x1172   : > { %v1931_v20 = vmul.f32 %v5052_v43, %v1915_v31 }
0x1173   : > { %v1940_v24 = vmul.f32 %v4003_v42, %v1932_v19 }
0x1174   : > { %v1939_v25 = vmul.f32 %v4003_v42, %v1931_v20 }
0x1175   : > { %v1948_v23 = vadd.f32 %v4004_v21, %v1940_v24 }
0x1176   : > { %v1947_v26 = vadd.f32 %v4004_v21, %v1939_v25 }
0x1178   : > { %4445 = vmatprep.mubr.msk.f32.mxu1 %vm582_vm0, %v1947_v26 }
0x1179   : > { %4446 = vmatmul.mubr.msk.f32.vlgmr.msra.gmra.mrb[12].mxu1 %vm582_vm0, %v1948_v23 }
0x124c   : > { %v4447_v28 = vpop.f32.mrb[12].mxu1 }
0x124d   : > { %v2040_v22 = vadd.f32 %v4447_v28, %v4010_v27  ;;  %v2034_v29 = vpop.f32.mrb[13].mxu1  ;;  %v5626_v28 = vld [vmem:[%s6009_s26] sm:$0xff] }
0x124e   : > { %v2035_v32 = vadd.f32 %v4010_v27, %v2034_v29 }
0x124f   : > { %v5582_v0 = vmul.f32 0.35355338, %v2040_v22 }
0x1250   : > { %v5562_v33 = vpack.i.bf16 %v2040_v22, %v2035_v32  ;;  %v5564_v34 = vmul.f32 0.35355338, %v2035_v32 }
0x1252   : > { %4966 = vrot.lane.b32.xlu0 %v5562_v33, %s5107_s22  ;;  %4452 = vmatprep.mubr.msk.f32.mxu1 %vm727_vm2, %v5564_v34  ;;  %s6015_s22 = smov 64  }
0x1256   : > { %4976 = vrot.lane.b32.xlu0 %v5562_v33, %s5108_s2  ;;  %s6024_s2 = sld [smem:[#allocation4_spill]] }
0x125a   : > { %2246 = vrot.lane.b32.xlu0 %v5564_v34, %s6012_s24 }
0x125e   : > { %4981 = vrot.lane.b32.xlu0 %v5562_v33, %s6013_s30  ;;  %s6021_s30 = smov 8  }
0x1262   : > { %2447 = vrot.lane.b32.xlu0 %v5564_v34, %s6014_s0 }
0x12c4   : > { %v4967_v35 = vpop.permute.xlu0 %4966 }
0x12c5   : > { %v4969_v36 = vunpack.i.h.bf16 %v4967_v35  ;;  %v4968_v37 = vunpack.i.l.bf16 %v4967_v35 }
0x12c7   : > { %v4750_v38 = vpack.c.bf16 %v4969_v36, %v4968_v37 }
0x12c8   : > { %v4977_v1 = vpop.permute.xlu0 %4976 }
0x12c9   : > { %4752 = vmatprep.subr.msk.bf16.mxu1 %vm5286_vm3, %v4750_v38  ;;  %v4979_v31 = vunpack.i.h.bf16 %v4977_v1  ;;  %v4978_v3 = vunpack.i.l.bf16 %v4977_v1 }
0x12ca   : > { %4755 = vmatpush3.bf16.xpose.msk.msra.mxu1 %vm5286_vm3, %v4750_v38 }
0x12cb   : > { %v4762_v7 = vpack.c.bf16 %v4979_v31, %v4978_v3 }
0x12cc   : > { %v2247_v39 = vpop.permute.xlu0 %2246 }
0x12d0   : > { %v4982_v40 = vpop.permute.xlu0 %4981 }
0x12d1   : > { %v4984_v44 = vunpack.i.h.bf16 %v4982_v40  ;;  %v4983_v45 = vunpack.i.l.bf16 %v4982_v40  ;;  %4453 = vmatmul.mubr.msk.f32.vlgmr.msra.gmra.mrb[14].mxu1 %vm727_vm2, %v5582_v0 }
0x12d3   : > { %v4774_v46 = vpack.c.bf16 %v4984_v44, %v4983_v45 }
0x12d4   : > { %v2448_v48 = vpop.permute.xlu0 %2447 }
0x12d5   : > { %4776 = vmatprep.subr.msk.bf16.mxu0 %vm5286_vm3, %v4774_v46  ;;  %4480 = vmatprep.mubr.msk.f32.mxu0 %vm727_vm2, %v2448_v48 }
0x12d6   : > { %4779 = vmatpush3.bf16.xpose.msk.msra.mxu0 %vm5286_vm3, %v4774_v46 }
0x13a4   : > { %v4454_v50 = vpop.f32.mrb[14].mxu1 }
0x13a5   : > { %v2127_v52 = vpop.f32.mrb[15].mxu1  ;;  %v2133_v54 = vadd.f32 %v4454_v50, %v5304_v51 }
0x13a6   : > { %v2128_v53 = vadd.f32 %v2127_v52, %v5299_v49 }
0x13a7   : > { %v2139_v41 = vsel %vm817_vm5, %v2133_v54, -inf }
0x13a8   : > { %v2136_v55 = vsel %vm813_vm4, %v2128_v53, -inf }
0x13a9   : > { %2137 = vmax.xlane.f32.xlu1 %v2136_v55 }
0x13ad   : > { %2140 = vmax.xlane.f32.xlu1 %v2139_v41 }
0x13be   : > { %4971 = vrot.lane.b32.xlu1 %v5562_v33, %s6015_s22 }
0x1436   : > { %v2138_v58 = vpop.xlane.xlu1 %2137 }
0x1437   : > { %v2142_v59 = vsub.f32 %v2128_v53, %v2138_v58 }
0x1439   : > { %v2144_v62 = vmul.f32 1.442695, %v2142_v59 }
0x143a   : > { %v2141_v60 = vpop.xlane.xlu1 %2140 }
0x143b   : > { %v2143_v61 = vsub.f32 %v2133_v54, %v2141_v60 }
0x143d   : > { %v2146_v30 = vmul.f32 1.442695, %v2143_v61 }
0x143e   : > { %v4972_v2 = vpop.permute.xlu1 %4971 }
0x143f   : > { %5053 = vpow2.f32 %v2146_v30  ;;  %v4974_v4 = vunpack.i.h.bf16 %v4972_v2  ;;  %v4973_v5 = vunpack.i.l.bf16 %v4972_v2 }
0x1440   : > { %5055 = vpow2.f32 %v2144_v62 }
0x1441   : > { %v4756_v6 = vpack.c.bf16 %v4974_v4, %v4973_v5 }
0x1443   : > { %4758 = vmatprep.subr.msk.bf16.mxu1 %vm5314_vm8, %v4756_v6 }
0x1444   : > { %4761 = vmatpush3.bf16.msk.msra.mxu1 %vm5314_vm8, %v4756_v6 }
0x1445   : > { %4764 = vmatprep.subr.msk.bf16.mxu1 %vm5286_vm3, %v4762_v7 }
0x1449   : > { %v5054_v63 = vpop.eup %5053 }
0x144a   : > { %v2151_v8 = vsel %vm817_vm5, %v5054_v63, 0.0  ;;  %v5056_v9 = vpop.eup %5055 }
0x144b   : > { %2152 = vadd.xlane.f32.xlu1 %v2151_v8  ;;  %v2148_v10 = vsel %vm813_vm4, %v5056_v9, 0.0 }
0x144f   : > { %2149 = vadd.xlane.f32.xlu1 %v2148_v10 }
0x1460   : > { %2248 = vrot.lane.b32.xlu1 %v5582_v0, %s6012_s24  ;;  %s6020_s24 = smov 40  }
0x1464   : > { %2449 = vrot.lane.b32.xlu1 %v5582_v0, %s6014_s0  ;;  %s6022_s0 = smov 16  }
0x14d8   : > { %v2153_v11 = vpop.xlane.xlu1 %2152 }
0x14d9   : > { %5057 = vrcp.f32 %v2153_v11 }
0x14dc   : > { %v2150_v12 = vpop.xlane.xlu1 %2149 }
0x14dd   : > { %5059 = vrcp.f32 %v2150_v12 }
0x14e0   : > { %v2249_v14 = vpop.permute.xlu1 %2248 }
0x14e3   : > { %v5058_v16 = vpop.eup %5057 }
0x14e4   : > { %v2450_v15 = vpop.permute.xlu1 %2449  ;;  %v2157_v42 = vmul.f32 %v5058_v16, %v5054_v63 }
0x14e5   : > { %4481 = vmatmul.mubr.msk.f32.vlgmr.msra.gmra.mrb[12].mxu0 %vm727_vm2, %v2450_v15 }
0x14e7   : > { %v5060_v17 = vpop.eup %5059 }
0x14e8   : > { %v2156_v18 = vmul.f32 %v5060_v17, %v5056_v9 }
0x14ea   : > { %4459 = vmatprep.mubr.msk.f32.mxu1 %vm813_vm4, %v2156_v18 }
0x14eb   : > { %4460 = vmatmul.mubr.msk.f32.vlgmr.msra.gmra.mrb[16].mxu1 %vm813_vm4, %v2157_v42 }
0x14ec   : > { %4767 = vmatpush3.bf16.xpose.msk.msra.mxu1 %vm5286_vm3, %v4762_v7  ;;  %4466 = vmatprep.mubr.msk.f32.mxu1 %vm727_vm2, %v2247_v39 }
0x14f3   : > { %4467 = vmatmul.mubr.msk.f32.vlgmr.msra.gmra.mrb[18].mxu1 %vm727_vm2, %v2249_v14 }
0x15b8   : > { %v4482_v43 = vpop.f32.mrb[12].mxu0 }
0x15b9   : > { %v2529_v19 = vpop.f32.mrb[13].mxu0 }
0x15ba   : > { %v2530_v22 = vadd.f32 %v5626_v28, %v2529_v19 }
0x15bc   : > { %v2538_v32 = vsel %vm813_vm4, %v2530_v22, -inf }
0x15be   : > { %v5616_v20 = vpop.f32.mrb[16].mxu1 }
0x15bf   : > { %v5618_v21 = vpop.f32.mrb[17].mxu1 }
0x15c6   : > { %v4468_v24 = vpop.f32.mrb[18].mxu1 }
0x15c7   : > { %v2334_v25 = vadd.f32 %v4468_v24, %v5304_v51  ;;  %v2328_v26 = vpop.f32.mrb[19].mxu1  ;;  %v5633_v51 = vld [vmem:[%s6009_s26 + $0x8] sm:$0x7f] }
0x15c8   : > { %v2329_v23 = vadd.f32 %v2328_v26, %v5299_v49  ;;  %v2535_v49 = vadd.f32 %v5633_v51, %v4482_v43 }
0x15c9   : > { %v2340_v27 = vsel %vm817_vm5, %v2334_v25, -inf }
0x15ca   : > { %2341 = vmax.xlane.f32.xlu1 %v2340_v27  ;;  %v2337_v29 = vsel %vm813_vm4, %v2329_v23, -inf  ;;  %v2541_v35 = vsel %vm817_vm5, %v2535_v49, -inf }
0x15cb   : > { %2338 = vmax.xlane.f32.xlu0 %v2337_v29 }
0x15cf   : > { %2539 = vmax.xlane.f32.xlu0 %v2538_v32 }
0x15d3   : > { %2542 = vmax.xlane.f32.xlu0 %v2541_v35 }
0x1657   : > { %v2342_v38 = vpop.xlane.xlu1 %2341 }
0x1658   : > { %v2339_v36 = vpop.xlane.xlu0 %2338  ;;  %v2344_v40 = vsub.f32 %v2334_v25, %v2342_v38 }
0x1659   : > { %v2343_v37 = vsub.f32 %v2329_v23, %v2339_v36 }
0x165a   : > { %v2347_v50 = vmul.f32 1.442695, %v2344_v40 }
0x165b   : > { %v2345_v44 = vmul.f32 1.442695, %v2343_v37 }
0x165c   : > { %v2540_v1 = vpop.xlane.xlu0 %2539 }
0x165d   : > { %v2544_v39 = vsub.f32 %v2530_v22, %v2540_v1 }
0x165f   : > { %v2546_v45 = vmul.f32 1.442695, %v2544_v39 }
0x1660   : > { %v2543_v46 = vpop.xlane.xlu0 %2542 }
0x1661   : > { %5061 = vpow2.f32 %v2546_v45  ;;  %v2545_v48 = vsub.f32 %v2535_v49, %v2543_v46 }
0x1662   : > { %5063 = vpow2.f32 %v2345_v44 }
0x1663   : > { %v2548_v52 = vmul.f32 1.442695, %v2545_v48 }
0x1665   : > { %5065 = vpow2.f32 %v2548_v52 }
0x1666   : > { %5067 = vpow2.f32 %v2347_v50 }
0x166b   : > { %v5062_v53 = vpop.eup %5061 }
0x166c   : > { %v2550_v54 = vsel %vm813_vm4, %v5062_v53, 0.0  ;;  %v5064_v55 = vpop.eup %5063 }
0x166d   : > { %2551 = vadd.xlane.f32.xlu0 %v2550_v54  ;;  %v2349_v58 = vsel %vm813_vm4, %v5064_v55, 0.0 }
0x166f   : > { %v5066_v41 = vpop.eup %5065 }
0x1670   : > { %v2553_v59 = vsel %vm817_vm5, %v5066_v41, 0.0  ;;  %v5068_v60 = vpop.eup %5067 }
0x1671   : > { %2350 = vadd.xlane.f32.xlu0 %v2349_v58  ;;  %2554 = vadd.xlane.f32.xlu1 %v2553_v59  ;;  %v2352_v61 = vsel %vm817_vm5, %v5068_v60, 0.0  ;;  %v4041_v58 = vld [vmem:[%s5970_s7 + $0x20] sm:$0xff]  ;;  %v4042_v59 = vld [vmem:[%s5970_s7 + $0x28] sm:$0xff] }
0x1675   : > { %2353 = vadd.xlane.f32.xlu1 %v2352_v61  ;;  %v4798_v61 = vpack.c.bf16 %v4042_v59, %v4041_v58 }
0x1686   : > { %4991 = vrot.lane.b32.xlu1 %v5562_v33, %s6016_s1 }
0x1687   : > { %4986 = vrot.lane.b32.xlu0 %v5562_v33, %s6017_s20  ;;  %s6025_s20 = sshll.u32 %s6027_s28, 4 }
0x168a   : > { %4996 = vrot.lane.b32.xlu1 %v5562_v33, %s6018_s23 }
0x168b   : > { %2650 = vrot.lane.b32.xlu0 %v5582_v0, %s6019_s21 }
0x168e   : > { %2648 = vrot.lane.b32.xlu1 %v5564_v34, %s6019_s21  ;;  %s6023_s21 = smov 24  }
0x16fa   : > { %v2552_v62 = vpop.xlane.xlu0 %2551 }
0x16fe   : > { %v2555_v30 = vpop.xlane.xlu1 %2554  ;;  %v2351_v31 = vpop.xlane.xlu0 %2350 }
0x16ff   : > { %5069 = vrcp.f32 %v2351_v31 }
0x1700   : > { %5071 = vrcp.f32 %v2552_v62  ;;  %v4044_v62 = vld [vmem:[%s5970_s7 + $0x38] sm:$0xff] }
0x1702   : > { %v2354_v2 = vpop.xlane.xlu1 %2353  ;;  %v4987_v3 = vpop.permute.xlu0 %4986 }
0x1703   : > { %5073 = vrcp.f32 %v2354_v2  ;;  %v4989_v4 = vunpack.i.h.bf16 %v4987_v3  ;;  %v4988_v5 = vunpack.i.l.bf16 %v4987_v3 }
0x1704   : > { %5075 = vrcp.f32 %v2555_v30 }
0x1705   : > { %v4768_v6 = vpack.c.bf16 %v4989_v4, %v4988_v5 }
0x1706   : > { %v4992_v7 = vpop.permute.xlu1 %4991  ;;  %v2651_v24 = vpop.permute.xlu0 %2650 }
0x1707   : > { %v4994_v63 = vunpack.i.h.bf16 %v4992_v7  ;;  %v4993_v8 = vunpack.i.l.bf16 %v4992_v7  ;;  %4770 = vmatprep.subr.msk.bf16.mxu1 %vm5314_vm8, %v4768_v6 }
0x1708   : > { %4773 = vmatpush3.bf16.msk.msra.mxu1 %vm5314_vm8, %v4768_v6 }
0x1709   : > { %v4780_v34 = vpack.c.bf16 %v4994_v63, %v4993_v8  ;;  %v5070_v0 = vpop.eup %5069 }
0x170a   : > { %v4997_v9 = vpop.permute.xlu1 %4996  ;;  %v2357_v10 = vmul.f32 %v5070_v0, %v5064_v55  ;;  %v5072_v11 = vpop.eup %5071 }
0x170b   : > { %4782 = vmatprep.subr.msk.bf16.mxu1 %vm5314_vm8, %v4780_v34  ;;  %v4999_v12 = vunpack.i.h.bf16 %v4997_v9  ;;  %v4998_v14 = vunpack.i.l.bf16 %v4997_v9  ;;  %v2558_v18 = vmul.f32 %v5072_v11, %v5062_v53 }
0x170c   : > { %4473 = vmatprep.mubr.msk.f32.mxu1 %vm813_vm4, %v2357_v10 }
0x170d   : > { %v5074_v15 = vpop.eup %5073  ;;  %v4786_v42 = vpack.c.bf16 %v4999_v12, %v4998_v14 }
0x170e   : > { %v2358_v16 = vmul.f32 %v5074_v15, %v5068_v60  ;;  %v5076_v17 = vpop.eup %5075  ;;  %v2649_v19 = vpop.permute.xlu1 %2648  ;;  %v4043_v60 = vld [vmem:[%s5970_s7 + $0x30] sm:$0xff] }
0x170f   : > { %v2559_v43 = vmul.f32 %v5076_v17, %v5066_v41  ;;  %v4802_v30 = vpack.c.bf16 %v4044_v62, %v4043_v60 }
0x1710   : > { %4474 = vmatmul.mubr.msk.f32.vlgmr.msra.gmra.mrb[20].mxu1 %vm813_vm4, %v2358_v16 }
0x1711   : > { %4785 = vmatpush3.bf16.msk.msra.mxu1 %vm5314_vm8, %v4780_v34  ;;  %4487 = vmatprep.mubr.msk.f32.mxu1 %vm813_vm4, %v2558_v18 }
0x1712   : > { %4788 = vmatprep.subr.msk.bf16.mxu1 %vm5286_vm3, %v4786_v42 }
0x1714   : > { %4488 = vmatmul.mubr.msk.f32.vlgmr.msra.gmra.mrb[22].mxu1 %vm813_vm4, %v2559_v43 }
0x1715   : > { %4494 = vmatprep.mubr.msk.f32.mxu1 %vm727_vm2, %v2649_v19 }
0x171a   : > { %4791 = vmatpush3.bf16.xpose.msk.msra.mxu1 %vm5286_vm3, %v4786_v42 }
0x1721   : > { %4495 = vmatmul.mubr.msk.f32.vlgmr.msra.gmra.mrb[24].mxu1 %vm727_vm2, %v2651_v24 }
0x17e3   : > { %v4475_v25 = vpop.f32.mrb[20].mxu1 }
0x17e4   : > { %v2438_v26 = vpop.f32.mrb[21].mxu1 }
0x17e7   : > { %v4489_v23 = vpop.f32.mrb[22].mxu1 }
0x17e8   : > { %v2639_v27 = vpop.f32.mrb[23].mxu1 }
0x17f4   : > { %v4496_v22 = vpop.f32.mrb[24].mxu1 }
0x17f5   : > { %v2736_v29 = vadd.f32 %v5633_v51, %v4496_v22  ;;  %v2730_v49 = vpop.f32.mrb[25].mxu1 }
0x17f6   : > { %v2731_v32 = vadd.f32 %v5626_v28, %v2730_v49  ;;  %v4054_v49 = vld [vmem:[%s5974_s11 + $0x28] sm:$0xff] }
0x17f7   : > { %v2742_v35 = vsel %vm817_vm5, %v2736_v29, -inf }
0x17f8   : > { %2743 = vmax.xlane.f32.xlu0 %v2742_v35  ;;  %v2739_v36 = vsel %vm813_vm4, %v2731_v32, -inf  ;;  %v4055_v35 = vld [vmem:[%s5974_s11 + $0x30] sm:$0xff] }
0x17f9   : > { %2740 = vmax.xlane.f32.xlu1 %v2739_v36  ;;  %v4056_v36 = vld [vmem:[%s5974_s11 + $0x38] sm:$0xff] }
0x180a   : > { %5001 = vrot.lane.b32.xlu1 %v5562_v33, %s6020_s24  ;;  %s575_s24 = scalar_lea.vmem %s5981_s18, %s6025_s20 }
0x180e   : > { %2853 = vrot.lane.b32.xlu1 %v4475_v25, %s6021_s30 }
0x1812   : > { %2859 = vrot.lane.b32.xlu1 %v2639_v27, %s6022_s0 }
0x1816   : > { %2861 = vrot.lane.b32.xlu1 %v4489_v23, %s6022_s0 }
0x1885   : > { %v2744_v47 = vpop.xlane.xlu0 %2743 }
0x1886   : > { %v2746_v51 = vsub.f32 %v2736_v29, %v2744_v47  ;;  %v2741_v37 = vpop.xlane.xlu1 %2740  ;;  %v4053_v29 = vld [vmem:[%s5974_s11 + $0x20] sm:$0xff]  ;;  %v4810_v47 = vpack.c.bf16 %v4056_v36, %v4055_v35 }
0x1887   : > { %v2745_v38 = vsub.f32 %v2731_v32, %v2741_v37  ;;  %v4806_v32 = vpack.c.bf16 %v4054_v49, %v4053_v29  ;;  %v4062_v37 = vld [vmem:[%s5976_s13 + $0x88] sm:$0xff]  ;;  %v4078_v29 = vld [vmem:[%s5977_s14 + $0x1] ss:$0 sm:$0xff] }
0x1888   : > { %v2749_v28 = vmul.f32 1.442695, %v2746_v51  ;;  %v4061_v51 = vld [vmem:[%s5976_s13 + $0x80] sm:$0xff] }
0x1889   : > { %v2747_v1 = vmul.f32 1.442695, %v2745_v38  ;;  %4807 = vmatprep.subr.bf16.mxu1 %v4806_v32  ;;  %v4063_v38 = vld [vmem:[%s5976_s13 + $0x90] sm:$0xff] }
0x188a   : > { %v5002_v39 = vpop.permute.xlu1 %5001  ;;  %4809 = vmatpush3.bf16.msra.mxu1 %v4806_v32 }
0x188b   : > { %5077 = vpow2.f32 %v2747_v1  ;;  %v5004_v40 = vunpack.i.h.bf16 %v5002_v39  ;;  %v5003_v44 = vunpack.i.l.bf16 %v5002_v39  ;;  %4811 = vmatprep.subr.bf16.mxu1 %v4810_v47  ;;  %v4064_v1 = vld [vmem:[%s5976_s13 + $0x98] sm:$0xff] }
0x188c   : > { %5079 = vpow2.f32 %v2749_v28  ;;  %v4814_v28 = vpack.c.bf16 %v4062_v37, %v4061_v51  ;;  %v4818_v39 = vpack.c.bf16 %v4064_v1, %v4063_v38 }
0x188d   : > { %v4792_v45 = vpack.c.bf16 %v5004_v40, %v5003_v44  ;;  %v4065_v40 = vld [vmem:[%s5976_s13 + $0xa0] sm:$0xff]  ;;  %v4066_v44 = vld [vmem:[%s5976_s13 + $0xa8] sm:$0xff] }
0x188e   : > { %v2854_v3 = vpop.permute.xlu1 %2853  ;;  %4813 = vmatpush3.bf16.msra.mxu1 %v4810_v47 }
0x188f   : > { %4794 = vmatprep.subr.msk.bf16.mxu0 %vm5314_vm8, %v4792_v45  ;;  %v2874_v8 = vsel %vm727_vm2, %v5616_v20, %v2854_v3 }
0x1890   : > { %4797 = vmatpush3.bf16.msk.msra.mxu0 %vm5314_vm8, %v4792_v45  ;;  %v4822_v45 = vpack.c.bf16 %v4066_v44, %v4065_v40 }
0x1891   : > { %4799 = vmatprep.subr.bf16.mxu0 %v4798_v61 }
0x1892   : > { %v2860_v4 = vpop.permute.xlu1 %2859 }
0x1895   : > { %v5078_v33 = vpop.eup %5077 }
0x1896   : > { %v2751_v46 = vsel %vm813_vm4, %v5078_v33, 0.0  ;;  %v5080_v48 = vpop.eup %5079  ;;  %v2862_v6 = vpop.permute.xlu1 %2861 }
0x1897   : > { %2752 = vadd.xlane.f32.xlu0 %v2751_v46  ;;  %v2754_v50 = vsel %vm817_vm5, %v5080_v48, 0.0  ;;  %v2876_v9 = vsel %vm1555_vm9, %v2874_v8, %v2862_v6 }
0x189b   : > { %2755 = vadd.xlane.f32.xlu0 %v2754_v50 }
0x18b1   : > { %2851 = vrot.lane.b32.xlu0 %v2438_v26, %s6021_s30 }
0x1924   : > { %v2753_v52 = vpop.xlane.xlu0 %2752 }
0x1925   : > { %5081 = vrcp.f32 %v2753_v52 }
0x1928   : > { %v2756_v53 = vpop.xlane.xlu0 %2755 }
0x1929   : > { %5083 = vrcp.f32 %v2756_v53 }
0x192c   : > { %v2852_v5 = vpop.permute.xlu0 %2851 }
0x192d   : > { %v2873_v7 = vsel %vm727_vm2, %v5618_v21, %v2852_v5  ;;  %v4046_v21 = vld [vmem:[%s5971_s8 + $0x1] ss:$0 sm:$0xff]  ;;  %v4070_v5 = vld [vmem:[%s5976_s13 + $0xc8] sm:$0xff] }
0x192e   : > { %v2875_v34 = vsel %vm1555_vm9, %v2873_v7, %v2860_v4  ;;  %v4069_v4 = vld [vmem:[%s5976_s13 + $0xc0] sm:$0xff]  ;;  %v4071_v7 = vld [vmem:[%s5976_s13 + $0xd0] sm:$0xff] }
0x192f   : > { %v5082_v54 = vpop.eup %5081  ;;  %v4830_v6 = vpack.c.bf16 %v4070_v5, %v4069_v4 }
0x1930   : > { %v2759_v55 = vmul.f32 %v5082_v54, %v5078_v33 }
0x1932   : > { %4501 = vmatprep.mubr.msk.f32.mxu0 %vm813_vm4, %v2759_v55  ;;  %v4051_v55 = vld [vmem:[%s5972_s9 + $0x1] ss:$0 sm:$0xff] }
0x1933   : > { %v5084_v13 = vpop.eup %5083 }
0x1934   : > { %v2760_v41 = vmul.f32 %v5084_v13, %v5080_v48 }
0x1936   : > { %4502 = vmatmul.mubr.msk.f32.vlgmr.msra.gmra.mrb[14].mxu0 %vm813_vm4, %v2760_v41  ;;  %v4052_v41 = vld [vmem:[%s5973_s10 + $0x1] ss:$0 sm:$0xff] }
0x1937   : > { %4801 = vmatpush3.bf16.msra.mxu0 %v4798_v61 }
0x1938   : > { %4803 = vmatprep.subr.bf16.mxu0 %v4802_v30 }
0x193b   : > { %4805 = vmatpush3.bf16.msra.mxu0 %v4802_v30 }
0x193c   : > { %4815 = vmatprep.subr.bf16.mxu0 %v4814_v28 }
0x1a09   : > { %v4503_v31 = vpop.f32.mrb[14].mxu0 }
0x1a0a   : > { %2869 = vrot.lane.b32.xlu1 %v4503_v31, %s6023_s21  ;;  %v2840_v2 = vpop.f32.mrb[15].mxu0  ;;  %v4067_v31 = vld [vmem:[%s5976_s13 + $0xb0] sm:$0xff] }
0x1a0b   : > { %2867 = vrot.lane.b32.xlu0 %v2840_v2, %s6023_s21  ;;  %v4068_v2 = vld [vmem:[%s5976_s13 + $0xb8] sm:$0xff] }
0x1a0c   : > { %v4826_v3 = vpack.c.bf16 %v4068_v2, %v4067_v31  ;;  %v4126_v2 = vld [vmem:[%s5980_s17 + $0xc8] sm:$0xff] }
0x1a7c   : > { %v2870_v63 = vpop.permute.xlu1 %2869 }
0x1a7d   : > { %v2868_v0 = vpop.permute.xlu0 %2867  ;;  %v2878_v11 = vsel %vm1558_vm10, %v2876_v9, %v2870_v63  ;;  %v4072_v63 = vld [vmem:[%s5976_s13 + $0xd8] sm:$0xff] }
0x1a7e   : > { %v2877_v10 = vsel %vm1558_vm10, %v2875_v34, %v2868_v0  ;;  %v4834_v8 = vpack.c.bf16 %v4072_v63, %v4071_v7  ;;  %v4073_v34 = vld [vmem:[%s5976_s13 + $0xe0] sm:$0xff]  ;;  %v4074_v0 = vld [vmem:[%s5976_s13 + $0xe8] sm:$0xff] }
0x1a7f   : > { %4512 = vmatprep.mubr.msk.f32.mxu0 %vm582_vm0, %v2877_v10  ;;  %v4838_v9 = vpack.c.bf16 %v4074_v0, %v4073_v34  ;;  %v4075_v10 = vld [vmem:[%s5976_s13 + $0xf0] sm:$0xff]  ;;  %v4079_v0 = vld [vmem:[%s5978_s15] ss:$0 sm:$0xff] }
0x1a80   : > { %4513 = vmatmul.mubr.msk.f32.vlgmr.msra.gmra.mrb[16].mxu0 %vm582_vm0, %v2878_v11  ;;  %v4076_v11 = vld [vmem:[%s5976_s13 + $0xf8] sm:$0xff] }
0x1a81   : > { %4817 = vmatpush3.bf16.msra.mxu0 %v4814_v28 }
0x1a82   : > { %4819 = vmatprep.subr.bf16.mxu0 %v4818_v39 }
0x1a85   : > { %4821 = vmatpush3.bf16.msra.mxu0 %v4818_v39 }
0x1a86   : > { %4823 = vmatprep.subr.bf16.mxu0 %v4822_v45 }
0x1a89   : > { %4825 = vmatpush3.bf16.msra.mxu0 %v4822_v45 }
0x1a8a   : > { %4827 = vmatprep.subr.bf16.mxu0 %v4826_v3 }
0x1a8d   : > { %4829 = vmatpush3.bf16.msra.mxu0 %v4826_v3 }
0x1a8e   : > { %4831 = vmatprep.subr.bf16.mxu0 %v4830_v6 }
0x1a91   : > { %4833 = vmatpush3.bf16.msra.mxu0 %v4830_v6 }
0x1a92   : > { %4835 = vmatprep.subr.bf16.mxu0 %v4834_v8 }
0x1a95   : > { %4837 = vmatpush3.bf16.msra.mxu0 %v4834_v8 }
0x1a96   : > { %4839 = vmatprep.subr.bf16.mxu0 %v4838_v9 }
0x1a99   : > { %4841 = vmatpush3.bf16.msra.mxu0 %v4838_v9 }
0x1b53   : > { %v4514_v12 = vpop.f32.mrb[16].mxu0 }
0x1b54   : > { %v2970_v14 = vadd.f32 %v4514_v12, %v4046_v21  ;;  %v2964_v20 = vpop.f32.mrb[17].mxu0  ;;  %v4058_v12 = vld [vmem:[%s5975_s12 + $0x1] ss:$0 sm:$0xff] }
0x1b55   : > { %v2965_v15 = vadd.f32 %v4046_v21, %v2964_v20  ;;  %v4842_v21 = vpack.c.bf16 %v4076_v11, %v4075_v10  ;;  %v4080_v11 = vld [vmem:[%s5979_s16] ss:$0 sm:$0xff] }
0x1b56   : > { %v5716_v16 = vadd.f32 %v2970_v14, %v5527_v56 }
0x1b57   : > { %v5719_v17 = vadd.f32 %v2965_v15, %v5529_v57  ;;  %4843 = vmatprep.subr.bf16.mxu0 %v4842_v21 }
0x1b58   : > { %v2982_v18 = vsel %vm586_vm1, %v5716_v16, 0.0  ;;  %4845 = vmatpush3.bf16.msra.mxu0 %v4842_v21 }
0x1b59   : > { %2983 = vadd.xlane.f32.xlu1 %v2982_v18  ;;  %v2979_v42 = vsel %vm582_vm0, %v5719_v17, 0.0 }
0x1b5a   : > { %2980 = vadd.xlane.f32.xlu0 %v2979_v42 }
0x1be6   : > { %v2984_v43 = vpop.xlane.xlu1 %2983 }
0x1be7   : > { %v2986_v19 = vmul.f32 0.03125, %v2984_v43  ;;  %v2981_v24 = vpop.xlane.xlu0 %2980 }
0x1be8   : > { %v2985_v25 = vmul.f32 0.03125, %v2981_v24 }
0x1be9   : > { %v2988_v26 = vsub.f32 %v5716_v16, %v2986_v19 }
0x1bea   : > { %v2987_v56 = vsub.f32 %v5719_v17, %v2985_v25 }
0x1beb   : > { %v2990_v27 = vmul.f32 %v2988_v26, %v2988_v26 }
0x1bec   : > { %v2989_v23 = vmul.f32 %v2987_v56, %v2987_v56 }
0x1bed   : > { %v2994_v22 = vsel %vm586_vm1, %v2990_v27, 0.0 }
0x1bee   : > { %v2991_v57 = vsel %vm582_vm0, %v2989_v23, 0.0 }
0x1bef   : > { %2992 = vadd.xlane.f32.xlu0 %v2991_v57 }
0x1bf3   : > { %2995 = vadd.xlane.f32.xlu0 %v2994_v22 }
0x1c7c   : > { %v2993_v33 = vpop.xlane.xlu0 %2992 }
0x1c7d   : > { %v2997_v46 = vmul.f32 0.03125, %v2993_v33 }
0x1c7f   : > { %v2999_v48 = vadd.f32 1e-05, %v2997_v46  ;;  %v3276_v46 = vld [vmem:[%s5980_s17] sm:$0xff] }
0x1c80   : > { %v2996_v50 = vpop.xlane.xlu0 %2995 }
0x1c81   : > { %5085 = vrsqrt.f32 %v2999_v48  ;;  %v2998_v52 = vmul.f32 0.03125, %v2996_v50  ;;  %v3277_v48 = vld [vmem:[%s5980_s17 + $0x8] sm:$0xff]  ;;  %v4109_v50 = vld [vmem:[%s5980_s17 + $0x80] sm:$0xff] }
0x1c83   : > { %v3000_v53 = vadd.f32 1e-05, %v2998_v52  ;;  %v4846_v52 = vpack.c.bf16 %v3277_v48, %v3276_v46  ;;  %v3275_v48 = vld [vmem:[%s6024_s2 + $0x8] sm:$0xf] }
0x1c85   : > { %5087 = vrsqrt.f32 %v3000_v53  ;;  %v4110_v53 = vld [vmem:[%s5980_s17 + $0x88] sm:$0xff]  ;;  %4847 = vmatprep.subr.bf16.mxu1 %v4846_v52 }
0x1c8b   : > { %v5086_v54 = vpop.eup %5085 }
0x1c8c   : > { %v3003_v13 = vmul.f32 %v5086_v54, %v2987_v56  ;;  %v4878_v54 = vpack.c.bf16 %v4110_v53, %v4109_v50  ;;  %v4084_v50 = vld [vmem:[%s6024_s2 + $0x18] sm:$0xf]  ;;  %v4083_v53 = vld [vmem:[%s6024_s2 + $0x10] sm:$0xff] }
0x1c8e   : > { %v3011_v58 = vmul.f32 %v4051_v55, %v3003_v13  ;;  %4879 = vmatprep.subr.bf16.mxu0 %v4878_v54  ;;  %v3279_v13 = vld [vmem:[%s5980_s17 + $0x18] sm:$0xff] }
0x1c8f   : > { %v5088_v59 = vpop.eup %5087 }
0x1c90   : > { %v3004_v60 = vmul.f32 %v5088_v59, %v2988_v26  ;;  %v3019_v61 = vadd.f32 %v4052_v41, %v3011_v58  ;;  %v4112_v59 = vld [vmem:[%s5980_s17 + $0x98] sm:$0xff] }
0x1c92   : > { %v3012_v62 = vmul.f32 %v4051_v55, %v3004_v60  ;;  %4523 = vmatprep.mubr.msk.f32.mxu1 %vm582_vm0, %v3019_v61  ;;  %v3278_v55 = vld [vmem:[%s5980_s17 + $0x10] sm:$0xff]  ;;  %v4085_v61 = vld [vmem:[%s5980_s17 + $0x20] sm:$0xff] }
0x1c93   : > { %v4850_v58 = vpack.c.bf16 %v3279_v13, %v3278_v55 }
0x1c94   : > { %v3020_v30 = vadd.f32 %v4052_v41, %v3012_v62  ;;  %v4111_v41 = vld [vmem:[%s5980_s17 + $0x90] sm:$0xff]  ;;  %v4086_v62 = vld [vmem:[%s5980_s17 + $0x28] sm:$0xff] }
0x1c95   : > { %v4882_v60 = vpack.c.bf16 %v4112_v59, %v4111_v41  ;;  %v4854_v31 = vpack.c.bf16 %v4086_v62, %v4085_v61 }
0x1c96   : > { %4524 = vmatmul.mubr.msk.f32.vlgmr.msra.gmra.mrb[26].mxu1 %vm582_vm0, %v3020_v30  ;;  %v4125_v30 = vld [vmem:[%s5980_s17 + $0xc0] sm:$0xff] }
0x1c97   : > { %4849 = vmatpush3.bf16.msra.mxu1 %v4846_v52  ;;  %v4894_v3 = vpack.c.bf16 %v4126_v2, %v4125_v30  ;;  %v3274_v52 = vld [vmem:[%s6024_s2] sm:$0xff] }
0x1c98   : > { %4851 = vmatprep.subr.bf16.mxu1 %v4850_v58  ;;  %v4091_v2 = vld [vmem:[%s6024_s2 + $0x20] sm:$0xff] }
0x1c9b   : > { %4853 = vmatpush3.bf16.msra.mxu1 %v4850_v58 }
0x1c9c   : > { %4855 = vmatprep.subr.bf16.mxu1 %v4854_v31 }
0x1d69   : > { %v4525_v14 = vpop.f32.mrb[26].mxu1 }
0x1d6a   : > { %v3112_v20 = vadd.f32 %v4525_v14, %v4058_v12  ;;  %v3106_v15 = vpop.f32.mrb[27].mxu1 }
0x1d6b   : > { %v3107_v18 = vadd.f32 %v4058_v12, %v3106_v15 }
0x1d6c   : > { %v3118_v42 = vmul.f32 0.70710677, %v3112_v20  ;;  %v3116_v23 = vmul.f32 0.5, %v3112_v20 }
0x1d6d   : > { %v3117_v43 = vmul.f32 0.70710677, %v3107_v18  ;;  %v3115_v26 = vmul.f32 0.5, %v3107_v18 }
0x1d6e   : > { %5089 = verf.f32 %v3118_v42  ;;  %v4087_v42 = vld [vmem:[%s5980_s17 + $0x30] sm:$0xff] }
0x1d6f   : > { %5091 = verf.f32 %v3117_v43 }
0x1d78   : > { %v5090_v19 = vpop.eup %5089 }
0x1d79   : > { %v5092_v24 = vpop.eup %5091  ;;  %v3122_v25 = vadd.f32 1.0, %v5090_v19  ;;  %v4088_v19 = vld [vmem:[%s5980_s17 + $0x38] sm:$0xff] }
0x1d7a   : > { %v3121_v56 = vadd.f32 1.0, %v5092_v24  ;;  %v4127_v24 = vld [vmem:[%s5980_s17 + $0xd0] sm:$0xff] }
0x1d7b   : > { %v3124_v27 = vmul.f32 %v3122_v25, %v3116_v23  ;;  %v4128_v25 = vld [vmem:[%s5980_s17 + $0xd8] sm:$0xff] }
0x1d7c   : > { %v3123_v57 = vmul.f32 %v3121_v56, %v3115_v26  ;;  %v4858_v56 = vpack.c.bf16 %v4088_v19, %v4087_v42  ;;  %v4898_v23 = vpack.c.bf16 %v4128_v25, %v4127_v24  ;;  %v4115_v24 = vld [vmem:[%s6024_s2 + $0x50] sm:$0xff]  ;;  %v4124_v25 = vld [vmem:[%s6024_s2 + $0x68] sm:$0xf] }
0x1d7e   : > { %4558 = vmatprep.mubr.f32.mxu0 %v3123_v57  ;;  %v4093_v57 = vld [vmem:[%s5980_s17 + $0x40] sm:$0xff] }
0x1d7f   : > { %4559 = vmatmul.mubr.f32.vlgmr.msra.gmra.mrb[18].mxu0 %v3124_v27  ;;  %v4094_v27 = vld [vmem:[%s5980_s17 + $0x48] sm:$0xff] }
0x1d80   : > { %4881 = vmatpush3.bf16.msra.mxu0 %v4878_v54 }
0x1d81   : > { %4883 = vmatprep.subr.bf16.mxu0 %v4882_v60 }
0x1d84   : > { %4885 = vmatpush3.bf16.msra.mxu0 %v4882_v60 }
0x1d85   : > { %4895 = vmatprep.subr.bf16.mxu0 %v4894_v3 }
0x1e52   : > { %v4560_v22 = vpop.f32.mrb[18].mxu0 }
0x1e53   : > { %v3218_v49 = vadd.f32 %v4560_v22, %v5716_v16  ;;  %v3208_v32 = vpop.f32.mrb[19].mxu0  ;;  %v4862_v22 = vpack.c.bf16 %v4094_v27, %v4093_v57 }
0x1e54   : > { %v3217_v35 = vadd.f32 %v3208_v32, %v5719_v17 }
0x1e55   : > { %v3228_v36 = vadd.f32 %v4078_v29, %v3218_v49  ;;  %v4096_v49 = vld [vmem:[%s5980_s17 + $0x58] sm:$0xff] }
0x1e56   : > { %v3227_v47 = vadd.f32 %v4078_v29, %v3217_v35  ;;  %v4095_v29 = vld [vmem:[%s5980_s17 + $0x50] sm:$0xff]  ;;  %v4101_v35 = vld [vmem:[%s5980_s17 + $0x60] sm:$0xff] }
0x1e57   : > { %v3235_v51 = vsel %vm586_vm1, %v3228_v36, 0.0  ;;  %v4866_v32 = vpack.c.bf16 %v4096_v49, %v4095_v29 }
0x1e58   : > { %3236 = vadd.xlane.f32.xlu1 %v3235_v51  ;;  %v3232_v37 = vsel %vm3231_vm11, %v3227_v47, 0.0  ;;  %v4103_v51 = vld [vmem:[%s5980_s17 + $0x70] sm:$0xff] }
0x1e59   : > { %3233 = vadd.xlane.f32.xlu0 %v3232_v37  ;;  %v4104_v37 = vld [vmem:[%s5980_s17 + $0x78] sm:$0xff] }
0x1ee5   : > { %v3237_v38 = vpop.xlane.xlu1 %3236 }
0x1ee6   : > { %v3239_v28 = vmul.f32 0.03125, %v3237_v38  ;;  %v3234_v1 = vpop.xlane.xlu0 %3233  ;;  %v4874_v38 = vpack.c.bf16 %v4104_v37, %v4103_v51 }
0x1ee7   : > { %v3238_v39 = vmul.f32 0.03125, %v3234_v1  ;;  %v4118_v1 = vld [vmem:[%s5980_s17 + $0xa8] sm:$0xff] }
0x1ee8   : > { %v3241_v40 = vsub.f32 %v3228_v36, %v3239_v28  ;;  %v4102_v36 = vld [vmem:[%s5980_s17 + $0x68] sm:$0xff]  ;;  %v4117_v28 = vld [vmem:[%s5980_s17 + $0xa0] sm:$0xff] }
0x1ee9   : > { %v3240_v44 = vsub.f32 %v3227_v47, %v3238_v39  ;;  %v4870_v47 = vpack.c.bf16 %v4102_v36, %v4101_v35  ;;  %v4886_v39 = vpack.c.bf16 %v4118_v1, %v4117_v28 }
0x1eea   : > { %v3243_v45 = vmul.f32 %v3241_v40, %v3241_v40 }
0x1eeb   : > { %v3242_v16 = vmul.f32 %v3240_v44, %v3240_v44 }
0x1eec   : > { %v3247_v33 = vsel %vm586_vm1, %v3243_v45, 0.0 }
0x1eed   : > { %3248 = vadd.xlane.f32.xlu1 %v3247_v33  ;;  %v3244_v17 = vsel %vm3231_vm11, %v3242_v16, 0.0 }
0x1eee   : > { %3245 = vadd.xlane.f32.xlu0 %v3244_v17 }
0x1f7a   : > { %v3249_v4 = vpop.xlane.xlu1 %3248 }
0x1f7b   : > { %v3251_v5 = vmul.f32 0.03125, %v3249_v4  ;;  %v3246_v6 = vpop.xlane.xlu0 %3245 }
0x1f7c   : > { %v3250_v7 = vmul.f32 0.03125, %v3246_v6 }
0x1f7d   : > { %v3253_v63 = vadd.f32 1e-05, %v3251_v5 }
0x1f7e   : > { %v3252_v8 = vadd.f32 1e-05, %v3250_v7 }
0x1f7f   : > { %5093 = vrsqrt.f32 %v3253_v63 }
0x1f80   : > { %5095 = vrsqrt.f32 %v3252_v8  ;;  %v4100_v8 = vld [vmem:[%s6024_s2 + $0x38] sm:$0xf] }
0x1f89   : > { %v5094_v34 = vpop.eup %5093 }
0x1f8a   : > { %v5096_v9 = vpop.eup %5095  ;;  %v3257_v10 = vmul.f32 %v5094_v34, %v3241_v40  ;;  %v4119_v40 = vld [vmem:[%s5980_s17 + $0xb0] sm:$0xff] }
0x1f8b   : > { %v3256_v21 = vmul.f32 %v5096_v9, %v3240_v44  ;;  %v4120_v44 = vld [vmem:[%s5980_s17 + $0xb8] sm:$0xff]  ;;  %v4099_v34 = vld [vmem:[%s6024_s2 + $0x30] sm:$0xff] }
0x1f8c   : > { %v3265_v12 = vmul.f32 %v4079_v0, %v3257_v10  ;;  %v4890_v45 = vpack.c.bf16 %v4120_v44, %v4119_v40  ;;  %v4107_v10 = vld [vmem:[%s6024_s2 + $0x40] sm:$0xff] }
0x1f8d   : > { %v3264_v14 = vmul.f32 %v4079_v0, %v3256_v21  ;;  %v4108_v0 = vld [vmem:[%s6024_s2 + $0x48] sm:$0xf] }
0x1f8e   : > { %v3273_v20 = vadd.f32 %v4080_v11, %v3265_v12 }
0x1f8f   : > { %v3272_v15 = vadd.f32 %v4080_v11, %v3264_v14 }
0x1f90   : > { %v3284_v18 = vrot.slane %v3273_v20, 3 }
0x1f91   : > { %v3283_v43 = vrot.slane %v3272_v15, 3 }
0x1f93   : > { %v3285_v26 = vsel %vm3282_vm12, %v3283_v43, %v3284_v18  ;;  %v4116_v43 = vld [vmem:[%s6024_s2 + $0x58] sm:$0xf] }
0x1f94   : > { %4569 = vmatprep.mubr.msk.f32.mxu1 %vm582_vm0, %v3285_v26  ;;  %4613 = vmatprep.mubr.msk.f32.mxu0 %vm582_vm0, %v3285_v26 }
0x1f95   : > { %4570 = vmatmul.mubr.msk.f32.vlgmr.msra.gmra.mrb[28].mxu1 %vm582_vm0, %v3284_v18  ;;  %4614 = vmatmul.mubr.msk.f32.vlgmr.msra.gmra.mrb[20].mxu0 %vm582_vm0, %v3284_v18 }
0x1f96   : > { %4857 = vmatpush3.bf16.msra.mxu1 %v4854_v31  ;;  %4897 = vmatpush3.bf16.msra.mxu0 %v4894_v3  ;;  %v4092_v31 = vld [vmem:[%s6024_s2 + $0x28] sm:$0xf] }
0x1f97   : > { %4580 = vmatprep.mubr.msk.f32.mxu1 %vm582_vm0, %v3285_v26  ;;  %4635 = vmatprep.mubr.msk.f32.mxu0 %vm582_vm0, %v3285_v26 }
0x1f98   : > { %4859 = vmatprep.subr.bf16.mxu1 %v4858_v56  ;;  %4899 = vmatprep.subr.bf16.mxu0 %v4898_v23 }
0x1f9a   : > { %4861 = vmatpush3.bf16.msra.mxu1 %v4858_v56  ;;  %4901 = vmatpush3.bf16.msra.mxu0 %v4898_v23  ;;  %v4123_v56 = vld [vmem:[%s6024_s2 + $0x60] sm:$0xff] }
0x1f9b   : > { %4863 = vmatprep.subr.bf16.mxu1 %v4862_v22 }
0x1f9d   : > { %4581 = vmatmul.mubr.msk.f32.vlgmr.msra.gmra.mrb[30].mxu1 %vm582_vm0, %v3284_v18  ;;  %4636 = vmatmul.mubr.msk.f32.vlgmr.msra.gmra.mrb[22].mxu0 %vm582_vm0, %v3284_v18 }
0x1f9e   : > { %4865 = vmatpush3.bf16.msra.mxu1 %v4862_v22  ;;  %4591 = vmatprep.mubr.msk.f32.mxu1 %vm582_vm0, %v3285_v26 }
0x1f9f   : > { %4867 = vmatprep.subr.bf16.mxu1 %v4866_v32 }
0x1fa2   : > { %4869 = vmatpush3.bf16.msra.mxu1 %v4866_v32 }
0x1fa3   : > { %4871 = vmatprep.subr.bf16.mxu1 %v4870_v47 }
0x1fa5   : > { %4592 = vmatmul.mubr.msk.f32.vlgmr.msra.gmra.mrb[32].mxu1 %vm582_vm0, %v3284_v18 }
0x1fa6   : > { %4873 = vmatpush3.bf16.msra.mxu1 %v4870_v47  ;;  %4602 = vmatprep.mubr.msk.f32.mxu1 %vm582_vm0, %v3285_v26 }
0x1fa7   : > { %4875 = vmatprep.subr.bf16.mxu1 %v4874_v38 }
0x1faa   : > { %4877 = vmatpush3.bf16.msra.mxu1 %v4874_v38 }
0x1fab   : > { %4887 = vmatprep.subr.bf16.mxu1 %v4886_v39 }
0x1fad   : > { %4603 = vmatmul.mubr.msk.f32.vlgmr.msra.gmra.mrb[34].mxu1 %vm582_vm0, %v3284_v18 }
0x1fae   : > { %4889 = vmatpush3.bf16.msra.mxu1 %v4886_v39  ;;  %4624 = vmatprep.mubr.msk.f32.mxu1 %vm582_vm0, %v3285_v26 }
0x1faf   : > { %4891 = vmatprep.subr.bf16.mxu1 %v4890_v45 }
0x1fb2   : > { %4893 = vmatpush3.bf16.msra.mxu1 %v4890_v45 }
0x1fb5   : > { %4625 = vmatmul.mubr.msk.f32.vlgmr.msra.gmra.mrb[36].mxu1 %vm582_vm0, %v3284_v18 }
0x2068   : > { %v4571_v16 = vpop.f32.mrb[28].mxu1  ;;  %v4615_v33 = vpop.f32.mrb[20].mxu0 }
0x2069   : > { %v3356_v17 = vpop.f32.mrb[29].mxu1  ;;  %v3704_v46 = vpop.f32.mrb[21].mxu0  ;;  %v3366_v13 = vmul.f32 %v4571_v16, %v3275_v48  ;;  %v3714_v14 = vmul.f32 %v4615_v33, %v4108_v0 }
0x206a   : > { %v3365_v60 = vmul.f32 %v3356_v17, %v3274_v52  ;;  %v3713_v15 = vmul.f32 %v4107_v10, %v3704_v46 }
0x2070   : > { %v4582_v54 = vpop.f32.mrb[30].mxu1  ;;  %v4637_v55 = vpop.f32.mrb[22].mxu0 }
0x2071   : > { %v3453_v41 = vmul.f32 %v4582_v54, %v4084_v50  ;;  %v3443_v58 = vpop.f32.mrb[31].mxu1  ;;  %v3878_v59 = vpop.f32.mrb[23].mxu0  ;;  %v3888_v22 = vmul.f32 %v4637_v55, %v4124_v25 }
0x2072   : > { %v3452_v61 = vmul.f32 %v4083_v53, %v3443_v58  ;;  %v3887_v49 = vmul.f32 %v4123_v56, %v3878_v59 }
0x2073   : > { %v3455_v62 = vadd.f32 %v3453_v41, %v3366_v13 }
0x2074   : > { %v3454_v30 = vadd.f32 %v3452_v61, %v3365_v60 }
0x2078   : > { %v4593_v3 = vpop.f32.mrb[32].mxu1 }
0x2079   : > { %v3540_v4 = vmul.f32 %v4593_v3, %v4092_v31  ;;  %v3530_v5 = vpop.f32.mrb[33].mxu1 }
0x207a   : > { %v3539_v6 = vmul.f32 %v4091_v2, %v3530_v5 }
0x207b   : > { %v3542_v7 = vadd.f32 %v3540_v4, %v3455_v62 }
0x207c   : > { %v3541_v63 = vadd.f32 %v3539_v6, %v3454_v30 }
0x2080   : > { %v4604_v9 = vpop.f32.mrb[34].mxu1 }
0x2081   : > { %v3627_v11 = vmul.f32 %v4604_v9, %v4100_v8  ;;  %v3617_v21 = vpop.f32.mrb[35].mxu1 }
0x2082   : > { %v3626_v12 = vmul.f32 %v4099_v34, %v3617_v21 }
0x2083   : > { %v3629_v20 = vadd.f32 %v3627_v11, %v3542_v7 }
0x2084   : > { %v3628_v18 = vadd.f32 %v3626_v12, %v3541_v63 }
0x2085   : > { %v3716_v42 = vadd.f32 %v3714_v14, %v3629_v20 }
0x2086   : > { %v3715_v19 = vadd.f32 %v3713_v15, %v3628_v18 }
0x2088   : > { %v4626_v26 = vpop.f32.mrb[36].mxu1 }
0x2089   : > { %v3801_v23 = vmul.f32 %v4626_v26, %v4116_v43  ;;  %v3791_v57 = vpop.f32.mrb[37].mxu1 }
0x208a   : > { %v3800_v27 = vmul.f32 %v4115_v24, %v3791_v57 }
0x208b   : > { %v3803_v29 = vadd.f32 %v3801_v23, %v3716_v42 }
0x208c   : > { %v3802_v32 = vadd.f32 %v3800_v27, %v3715_v19 }
0x208d   : > { %v3890_v35 = vadd.f32 %v3888_v22, %v3803_v29 }
0x208e   : > { %v3889_v36 = vadd.f32 %v3887_v49, %v3802_v32 }
0x208f   : > { %3894 = vst.msk [vmem:[%s575_s24 + $0x8] sm:$0xf] %vm3893_vm13, %v3890_v35 }
0x2090   : > { %3892 = vst.msk [vmem:[%s575_s24] sm:$0xff] %vm3891_vm14, %v3889_v36 }
0x2091 PF: > { %s28_s27 = sadd.s32 1, %s5105_s27  }
0x2092   : > { %p25_p4 = scmp.ge.s32.totalorder %s28_s27, 4  }
0x2094   :  { %27 = sbr.rel (!%p25_p4) target bundleno = 4 (0x4), region = 146 }

</bundles_post_ra>
